<compile_context>
chip_gen: v6e
topology: v6e:2x2x1
jax: 0.10.0
libtpu: 0.0.40
codegen_flags: <defaults>
</compile_context>

<pallas_src>
import math
import functools

import jax
import jax.numpy as jnp
import numpy as np
from jax.experimental import pallas as pl
from jax.experimental.pallas import tpu as pltpu


# ----------------------------- kernel ---------------------------------------

def _layernorm(x, gamma, beta, eps=1e-5):
    # x: (N, D); gamma/beta: (1, D)
    mean = jnp.mean(x, axis=-1, keepdims=True)
    var = jnp.mean((x - mean) ** 2, axis=-1, keepdims=True)
    return (x - mean) * jax.lax.rsqrt(var + eps) * gamma + beta


def source_attention_kernel(n_head,
                            x_ref, m_ref, bias_ref,
                            ln_g, ln_b,
                            wq_h, bq_h, wkv_h, bkv_h, wo_h, bo,
                            out_ref, attn_ref,
                            kv_scr):
    """One (batch element, query tile) step of SourceAttentionBlock."""
    tq, D = x_ref.shape[1], x_ref.shape[2]
    Sm = m_ref.shape[1]
    H = n_head

    # --- K/V projections: once per batch element (first query tile), kept
    # resident in bf16 VMEM across all query tiles of this batch element. ---
    @pl.when(pl.program_id(1) == 0)
    def _():
        m2d = m_ref[0].astype(jnp.bfloat16)                      # (Sm, D)
        for j in range(2 * H):                                   # K heads, then V heads
            kv = jnp.dot(m2d, wkv_h[j],
                         preferred_element_type=jnp.float32) + bkv_h[j]
            kv_scr[j] = kv.astype(jnp.bfloat16)                  # (Sm, d_k)

    # --- Pre-norm on the query stream (f32 VPU math, single bf16 cast). ---
    x2d = x_ref[0]                                               # (tq, D) f32
    xn = _layernorm(x2d, ln_g[...], ln_b[...]).astype(jnp.bfloat16)
    bias2d = bias_ref[0]                                         # (1, Sm) additive bias

    # Running accumulator folds merge-heads + Wo + bo + residual:
    #   out = x + bo + sum_h ctx_h @ Wo_h        (dropout == identity)
    acc = x2d + bo[...]                                          # (tq, D) f32

    # H is a small compile-time constant; batch/query tiling is on the grid,
    # so per-iteration live values here are tiny (tq x Sm / tq x d_k).
    for h in range(H):
        # Q projection for this head (1/sqrt(d_k) folded into wq_h/bq_h).
        qh = (jnp.dot(xn, wq_h[h], preferred_element_type=jnp.float32)
              + bq_h[h]).astype(jnp.bfloat16)                    # (tq, d_k)
        kh = kv_scr[h]                                           # (Sm, d_k) bf16
        vh = kv_scr[H + h]                                       # (Sm, d_k) bf16

        s = jnp.einsum('qd,kd->qk', qh, kh,
                       preferred_element_type=jnp.float32)       # (tq, Sm)
        s = s + bias2d
        s = s - jnp.max(s, axis=-1, keepdims=True)
        e = jnp.exp(s)
        p = e * pl.reciprocal(jnp.sum(e, axis=-1, keepdims=True), approx=True)

        p_out = p.astype(attn_ref.dtype)                         # single cast
        attn_ref[0, h] = p_out                                   # dense (tq, Sm) store

        ctx = jnp.einsum('qk,kd->qd', p_out.astype(jnp.bfloat16), vh,
                         preferred_element_type=jnp.float32)     # (tq, d_k)
        acc = acc + jnp.dot(ctx.astype(jnp.bfloat16), wo_h[h],
                            preferred_element_type=jnp.float32)  # (tq, D)

    out_ref[0] = acc


# --------------------------- pallas_call wrapper -----------------------------

def _split_heads(w, b, n_head, scale=1.0):
    """(D_in, D_out), (1, D_out) -> (H, D_in, d_k), (H, 1, d_k)."""
    d_in, d_out = w.shape
    d_k = d_out // n_head
    w_h = (w.reshape(d_in, n_head, d_k) * scale).transpose(1, 0, 2)
    b_h = (b.reshape(n_head, d_k) * scale)[:, None, :]
    return w_h, b_h


def _estimate_vmem_bytes(block_sq, Sm, D, H, d_k, attn_dtype):
    """Rough per-step VMEM residency (double-buffered tiles + scratch + temps)."""
    f32, bf16 = 4, 2
    ab = np.dtype(attn_dtype).itemsize
    db = 2
    tiles = (db * block_sq * D * f32            # x tile
             + db * Sm * D * f32                # m tile
             + db * Sm * f32                    # bias tile
             + db * block_sq * D * f32          # out tile
             + db * H * block_sq * Sm * ab)     # attn tile
    resident = (4 * D * D * bf16                # wq/wkv(k+v)/wo
                + 6 * D * f32                   # biases + ln params
                + 2 * H * Sm * d_k * bf16)      # kv scratch
    live = (4 * block_sq * D * f32              # x2d / xn / acc / residual temps
            + 3 * block_sq * Sm * f32)          # scores / exp / attn temporaries
    return tiles + resident + live


def source_attention_block(x, m, mask, params, n_head, *, block_sq=None,
                           attn_dtype=jnp.bfloat16, vmem_limit_bytes=None):
    """Pallas-backed SourceAttentionBlock.forward -> (out, attn).

    x: (B, S, D) query stream, m: (B, Sm, D) memory, mask: (B, 1, Sm) float
    (1.0 = keep, 0.0 = masked).  attn defaults to bf16 (lane-dense writeback).
    """
    B, S, D = x.shape
    Bm, Sm, Dm = m.shape
    assert (Bm, Dm) == (B, D) and mask.shape == (B, 1, Sm) and D % n_head == 0
    d_k = D // n_head
    if block_sq is None:
        # TODO(synk): re-derive per generation; v7x (64 MiB VMEM) wants smaller
        # query tiles than v6e/v5e (128 MiB) at realistic S/Sm/D.
        block_sq = S if S <= 256 else 256
    assert S % block_sq == 0
    n_q = S // block_sq

    # --- weight prep (plain JAX glue, outside the kernel) ---
    scale = 1.0 / math.sqrt(d_k)
    wq_h, bq_h = _split_heads(params['wq'], params['bq'], n_head, scale)
    wq_h = wq_h.astype(jnp.bfloat16)                         # (H, D, d_k)
    wk_h, bk_h = _split_heads(params['wk'], params['bk'], n_head)
    wv_h, bv_h = _split_heads(params['wv'], params['bv'], n_head)
    wkv_h = jnp.concatenate([wk_h, wv_h], axis=0).astype(jnp.bfloat16)  # (2H, D, d_k)
    bkv_h = jnp.concatenate([bk_h, bv_h], axis=0)                       # (2H, 1, d_k)
    wo_h = params['wo'].reshape(n_head, d_k, D).astype(jnp.bfloat16)    # (H, d_k, D)
    bo = params['bo']
    ln_g, ln_b = params['ln_g'], params['ln_b']

    # Additive attention-mask bias precomputed outside the kernel.
    bias = jnp.where(mask == 0.0, -60000.0, 0.0).astype(jnp.float32)    # (B, 1, Sm)

    grid = (B, n_q)                      # batch parallel (megacore), q-tiles inner
    in_specs = [
        pl.BlockSpec((1, block_sq, D), lambda b, q: (b, q, 0)),         # x
        pl.BlockSpec((1, Sm, D), lambda b, q: (b, 0, 0)),               # m
        pl.BlockSpec((1, 1, Sm), lambda b, q: (b, 0, 0)),               # bias
        pl.BlockSpec((1, D), lambda b, q: (0, 0)),                      # ln_g
        pl.BlockSpec((1, D), lambda b, q: (0, 0)),                      # ln_b
        pl.BlockSpec((n_head, D, d_k), lambda b, q: (0, 0, 0)),         # wq_h
        pl.BlockSpec((n_head, 1, d_k), lambda b, q: (0, 0, 0)),         # bq_h
        pl.BlockSpec((2 * n_head, D, d_k), lambda b, q: (0, 0, 0)),     # wkv_h
        pl.BlockSpec((2 * n_head, 1, d_k), lambda b, q: (0, 0, 0)),     # bkv_h
        pl.BlockSpec((n_head, d_k, D), lambda b, q: (0, 0, 0)),         # wo_h
        pl.BlockSpec((1, D), lambda b, q: (0, 0)),                      # bo
    ]
    out_specs = (
        pl.BlockSpec((1, block_sq, D), lambda b, q: (b, q, 0)),
        pl.BlockSpec((1, n_head, block_sq, Sm), lambda b, q: (b, 0, q, 0)),
    )
    out_shape = (
        jax.ShapeDtypeStruct((B, S, D), jnp.float32),
        jax.ShapeDtypeStruct((B, n_head, S, Sm), attn_dtype),
    )

    if vmem_limit_bytes is None:
        est = _estimate_vmem_bytes(block_sq, Sm, D, n_head, d_k, attn_dtype)
        if est > (32 << 20):
            vmem_limit_bytes = min(int(est * 1.5), 100 << 20)

    kernel = functools.partial(source_attention_kernel, n_head)
    return pl.pallas_call(
        kernel,
        out_shape=out_shape,
        grid_spec=pltpu.PrefetchScalarGridSpec(
            num_scalar_prefetch=0,
            grid=grid,
            in_specs=in_specs,
            out_specs=out_specs,
            # K/V projections are carried across query tiles -> q axis arbitrary.
            scratch_shapes=[pltpu.VMEM((2 * n_head, Sm, d_k), jnp.bfloat16)],
        ),
        compiler_params=pltpu.CompilerParams(
            dimension_semantics=("parallel", "arbitrary"),
            vmem_limit_bytes=vmem_limit_bytes),
    )(x, m, bias, ln_g, ln_b, wq_h, bq_h, wkv_h, bkv_h, wo_h, bo)


# ------------------------------ params init ----------------------------------

def init_params(key, d_model):
    ks = jax.random.split(key, 10)

    def lin(kw, kb, fi, fo):
        return (jax.random.normal(kw, (fi, fo), jnp.float32) * 0.05,
                jax.random.normal(kb, (1, fo), jnp.float32) * 0.02)

    wq, bq = lin(ks[0], ks[1], d_model, d_model)
    wk, bk = lin(ks[2], ks[3], d_model, d_model)
    wv, bv = lin(ks[4], ks[5], d_model, d_model)
    wo, bo = lin(ks[6], ks[7], d_model, d_model)
    ln_g = 1.0 + 0.1 * jax.random.normal(ks[8], (1, d_model), jnp.float32)
    ln_b = 0.02 * jax.random.normal(ks[9], (1, d_model), jnp.float32)
    return dict(ln_g=ln_g, ln_b=ln_b, wq=wq, bq=bq, wk=wk, bk=bk,
                wv=wv, bv=bv, wo=wo, bo=bo)


# ------------------------- pure-JAX reference (check) ------------------------

def _ref_layernorm(x, g, b, eps=1e-5):
    mu = jnp.mean(x, axis=-1, keepdims=True)
    var = jnp.mean((x - mu) ** 2, axis=-1, keepdims=True)
    return (x - mu) / jnp.sqrt(var + eps) * g + b


def _ref_source_attention(x, m, mask, p, n_head):
    B, S, D = x.shape
    Sm = m.shape[1]
    d_k = D // n_head

    def lin(a, w, b):
        return a @ w + b

    xn = _ref_layernorm(x, p['ln_g'], p['ln_b'])
    q = lin(xn, p['wq'], p['bq']).reshape(B, S, n_head, d_k).transpose(0, 2, 1, 3)
    k = lin(m, p['wk'], p['bk']).reshape(B, Sm, n_head, d_k).transpose(0, 2, 1, 3)
    v = lin(m, p['wv'], p['bv']).reshape(B, Sm, n_head, d_k).transpose(0, 2, 1, 3)
    scores = jnp.einsum('bhqd,bhkd->bhqk', q, k) / math.sqrt(d_k)
    scores = jnp.where(mask[:, None, :, :] == 0.0, -60000.0, scores)
    attn = jax.nn.softmax(scores, axis=-1)
    ctx = jnp.einsum('bhqk,bhkd->bhqd', attn, v).transpose(0, 2, 1, 3).reshape(B, S, D)
    out = lin(ctx, p['wo'], p['bo']) + x      # dropout == identity
    return out, attn


# --------------------------------- main --------------------------------------

if __name__ == "__main__":
    B, S, Sm, D, H = 2, 8, 16, 32, 4

    key = jax.random.PRNGKey(0)
    kx, km, kp = jax.random.split(key, 3)
    x = jax.random.normal(kx, (B, S, D), jnp.float32)
    m = jax.random.normal(km, (B, Sm, D), jnp.float32)
    mask = jnp.ones((B, 1, Sm), jnp.float32)
    mask = mask.at[1, 0, 10:].set(0.0)        # mask tail of memory for batch 1

    params = init_params(kp, D)

    out, attn = source_attention_block(x, m, mask, params, H)
    jax.block_until_ready((out, attn))

    out_ref, attn_ref = _ref_source_attention(x, m, mask, params, H)
    # bf16 MXU operands + approx reciprocal + bf16 attn writeback -> loose tol.
    np.testing.assert_allclose(np.asarray(out), np.asarray(out_ref),
                               rtol=5e-3, atol=5e-3)
    np.testing.assert_allclose(np.asarray(attn.astype(jnp.float32)),
                               np.asarray(attn_ref), rtol=1e-2, atol=1e-2)

    print("KERNEL_OK")
</pallas_src>

<mosaic_0001>
module attributes {stable_mosaic.version = 11 : i64} {
  func.func @source_attention_kernel(%arg0: i32, %arg1: i32, %arg2: memref<1x8x32xf32, #tpu.memory_space<vmem>>, %arg3: memref<1x16x32xf32, #tpu.memory_space<vmem>>, %arg4: memref<1x1x16xf32, #tpu.memory_space<vmem>>, %arg5: memref<1x32xf32, #tpu.memory_space<vmem>>, %arg6: memref<1x32xf32, #tpu.memory_space<vmem>>, %arg7: memref<4x32x8xbf16, #tpu.memory_space<vmem>>, %arg8: memref<4x1x8xf32, #tpu.memory_space<vmem>>, %arg9: memref<8x32x8xbf16, #tpu.memory_space<vmem>>, %arg10: memref<8x1x8xf32, #tpu.memory_space<vmem>>, %arg11: memref<4x8x32xbf16, #tpu.memory_space<vmem>>, %arg12: memref<1x32xf32, #tpu.memory_space<vmem>>, %arg13: memref<1x8x32xf32, #tpu.memory_space<vmem>>, %arg14: memref<1x4x8x16xbf16, #tpu.memory_space<vmem>>, %arg15: memref<8x16x8xbf16, #tpu.memory_space<vmem>>) attributes {dimension_semantics = [#tpu.dimension_semantics<parallel>, #tpu.dimension_semantics<arbitrary>], iteration_bounds = array<i64: 2, 1>, scalar_prefetch = 0 : i64, scratch_operands = 1 : i64, tpu.core_type = #tpu.core_type<tc>, window_params = [{transform_indices = @transform_0, window_bounds = array<i64: 1, 8, 32>}, {transform_indices = @transform_1, window_bounds = array<i64: 1, 16, 32>}, {transform_indices = @transform_2, window_bounds = array<i64: 1, 1, 16>}, {pipeline_mode = #tpu.pipeline_mode<synchronous>, transform_indices = @transform_3, window_bounds = array<i64: 1, 32>}, {pipeline_mode = #tpu.pipeline_mode<synchronous>, transform_indices = @transform_4, window_bounds = array<i64: 1, 32>}, {pipeline_mode = #tpu.pipeline_mode<synchronous>, transform_indices = @transform_5, window_bounds = array<i64: 4, 32, 8>}, {pipeline_mode = #tpu.pipeline_mode<synchronous>, transform_indices = @transform_6, window_bounds = array<i64: 4, 1, 8>}, {pipeline_mode = #tpu.pipeline_mode<synchronous>, transform_indices = @transform_7, window_bounds = array<i64: 8, 32, 8>}, {pipeline_mode = #tpu.pipeline_mode<synchronous>, transform_indices = @transform_8, window_bounds = array<i64: 8, 1, 8>}, {pipeline_mode = #tpu.pipeline_mode<synchronous>, transform_indices = @transform_9, window_bounds = array<i64: 4, 8, 32>}, {pipeline_mode = #tpu.pipeline_mode<synchronous>, transform_indices = @transform_10, window_bounds = array<i64: 1, 32>}, {transform_indices = @transform_11, window_bounds = array<i64: 1, 8, 32>}, {transform_indices = @transform_12, window_bounds = array<i64: 1, 4, 8, 16>}]} {
    %c0_i32 = arith.constant 0 : i32
    %0 = arith.cmpi eq, %arg1, %c0_i32 : i32
    %1 = arith.extui %0 : i1 to i32
    %c0_i32_0 = arith.constant 0 : i32
    %2 = arith.cmpi ne, %1, %c0_i32_0 : i32
    scf.if %2 {
      %c0_112 = arith.constant 0 : index
      %c0_113 = arith.constant 0 : index
      %c0_114 = arith.constant 0 : index
      %178 = vector.load %arg3[%c0_112, %c0_113, %c0_114] : memref<1x16x32xf32, #tpu.memory_space<vmem>>, vector<1x16x32xf32>
      %179 = vector.shape_cast %178 : vector<1x16x32xf32> to vector<16x32xf32>
      %180 = arith.truncf %179 : vector<16x32xf32> to vector<16x32xbf16>
      %c0_115 = arith.constant 0 : index
      %c0_116 = arith.constant 0 : index
      %c0_117 = arith.constant 0 : index
      %181 = vector.load %arg9[%c0_115, %c0_116, %c0_117] : memref<8x32x8xbf16, #tpu.memory_space<vmem>>, vector<1x32x8xbf16>
      %182 = vector.shape_cast %181 : vector<1x32x8xbf16> to vector<32x8xbf16>
      %cst_118 = arith.constant dense<0.000000e+00> : vector<16x8xf32>
      %183 = tpu.matmul %180, %182, %cst_118 {dimension_numbers = #tpu.dot_dimension_numbers<[1], [0], [0], [1], [0, 0, 1, 1], [], []>} : vector<16x32xbf16>, vector<32x8xbf16>, vector<16x8xf32> -> vector<16x8xf32>
      %c0_119 = arith.constant 0 : index
      %c0_120 = arith.constant 0 : index
      %c0_121 = arith.constant 0 : index
      %184 = vector.load %arg10[%c0_119, %c0_120, %c0_121] : memref<8x1x8xf32, #tpu.memory_space<vmem>>, vector<1x1x8xf32>
      %185 = vector.shape_cast %184 : vector<1x1x8xf32> to vector<1x8xf32>
      %186 = vector.broadcast %185 : vector<1x8xf32> to vector<16x8xf32>
      %187 = arith.addf %183, %186 : vector<16x8xf32>
      %188 = arith.truncf %187 : vector<16x8xf32> to vector<16x8xbf16>
      %c0_122 = arith.constant 0 : index
      %c0_123 = arith.constant 0 : index
      %c0_124 = arith.constant 0 : index
      %189 = vector.load %arg15[%c0_122, %c0_123, %c0_124] : memref<8x16x8xbf16, #tpu.memory_space<vmem>>, vector<1x16x8xbf16>
      %190 = vector.shape_cast %189 : vector<1x16x8xbf16> to vector<16x8xbf16>
      %191 = vector.shape_cast %188 : vector<16x8xbf16> to vector<1x16x8xbf16>
      tpu.vector_store %arg15[%c0_122, %c0_123, %c0_124], %191 {strides = array<i32>} : memref<8x16x8xbf16, #tpu.memory_space<vmem>>, vector<1x16x8xbf16>,
      %c1_125 = arith.constant 1 : index
      %c0_126 = arith.constant 0 : index
      %c0_127 = arith.constant 0 : index
      %192 = vector.load %arg9[%c1_125, %c0_126, %c0_127] : memref<8x32x8xbf16, #tpu.memory_space<vmem>>, vector<1x32x8xbf16>
      %193 = vector.shape_cast %192 : vector<1x32x8xbf16> to vector<32x8xbf16>
      %cst_128 = arith.constant dense<0.000000e+00> : vector<16x8xf32>
      %194 = tpu.matmul %180, %193, %cst_128 {dimension_numbers = #tpu.dot_dimension_numbers<[1], [0], [0], [1], [0, 0, 1, 1], [], []>} : vector<16x32xbf16>, vector<32x8xbf16>, vector<16x8xf32> -> vector<16x8xf32>
      %c1_129 = arith.constant 1 : index
      %c0_130 = arith.constant 0 : index
      %c0_131 = arith.constant 0 : index
      %195 = vector.load %arg10[%c1_129, %c0_130, %c0_131] : memref<8x1x8xf32, #tpu.memory_space<vmem>>, vector<1x1x8xf32>
      %196 = vector.shape_cast %195 : vector<1x1x8xf32> to vector<1x8xf32>
      %197 = vector.broadcast %196 : vector<1x8xf32> to vector<16x8xf32>
      %198 = arith.addf %194, %197 : vector<16x8xf32>
      %199 = arith.truncf %198 : vector<16x8xf32> to vector<16x8xbf16>
      %c1_132 = arith.constant 1 : index
      %c0_133 = arith.constant 0 : index
      %c0_134 = arith.constant 0 : index
      %200 = vector.load %arg15[%c1_132, %c0_133, %c0_134] : memref<8x16x8xbf16, #tpu.memory_space<vmem>>, vector<1x16x8xbf16>
      %201 = vector.shape_cast %200 : vector<1x16x8xbf16> to vector<16x8xbf16>
      %202 = vector.shape_cast %199 : vector<16x8xbf16> to vector<1x16x8xbf16>
      tpu.vector_store %arg15[%c1_132, %c0_133, %c0_134], %202 {strides = array<i32>} : memref<8x16x8xbf16, #tpu.memory_space<vmem>>, vector<1x16x8xbf16>,
      %c2_135 = arith.constant 2 : index
      %c0_136 = arith.constant 0 : index
      %c0_137 = arith.constant 0 : index
      %203 = vector.load %arg9[%c2_135, %c0_136, %c0_137] : memref<8x32x8xbf16, #tpu.memory_space<vmem>>, vector<1x32x8xbf16>
      %204 = vector.shape_cast %203 : vector<1x32x8xbf16> to vector<32x8xbf16>
      %cst_138 = arith.constant dense<0.000000e+00> : vector<16x8xf32>
      %205 = tpu.matmul %180, %204, %cst_138 {dimension_numbers = #tpu.dot_dimension_numbers<[1], [0], [0], [1], [0, 0, 1, 1], [], []>} : vector<16x32xbf16>, vector<32x8xbf16>, vector<16x8xf32> -> vector<16x8xf32>
      %c2_139 = arith.constant 2 : index
      %c0_140 = arith.constant 0 : index
      %c0_141 = arith.constant 0 : index
      %206 = vector.load %arg10[%c2_139, %c0_140, %c0_141] : memref<8x1x8xf32, #tpu.memory_space<vmem>>, vector<1x1x8xf32>
      %207 = vector.shape_cast %206 : vector<1x1x8xf32> to vector<1x8xf32>
      %208 = vector.broadcast %207 : vector<1x8xf32> to vector<16x8xf32>
      %209 = arith.addf %205, %208 : vector<16x8xf32>
      %210 = arith.truncf %209 : vector<16x8xf32> to vector<16x8xbf16>
      %c2_142 = arith.constant 2 : index
      %c0_143 = arith.constant 0 : index
      %c0_144 = arith.constant 0 : index
      %211 = vector.load %arg15[%c2_142, %c0_143, %c0_144] : memref<8x16x8xbf16, #tpu.memory_space<vmem>>, vector<1x16x8xbf16>
      %212 = vector.shape_cast %211 : vector<1x16x8xbf16> to vector<16x8xbf16>
      %213 = vector.shape_cast %210 : vector<16x8xbf16> to vector<1x16x8xbf16>
      tpu.vector_store %arg15[%c2_142, %c0_143, %c0_144], %213 {strides = array<i32>} : memref<8x16x8xbf16, #tpu.memory_space<vmem>>, vector<1x16x8xbf16>,
      %c3_145 = arith.constant 3 : index
      %c0_146 = arith.constant 0 : index
      %c0_147 = arith.constant 0 : index
      %214 = vector.load %arg9[%c3_145, %c0_146, %c0_147] : memref<8x32x8xbf16, #tpu.memory_space<vmem>>, vector<1x32x8xbf16>
      %215 = vector.shape_cast %214 : vector<1x32x8xbf16> to vector<32x8xbf16>
      %cst_148 = arith.constant dense<0.000000e+00> : vector<16x8xf32>
      %216 = tpu.matmul %180, %215, %cst_148 {dimension_numbers = #tpu.dot_dimension_numbers<[1], [0], [0], [1], [0, 0, 1, 1], [], []>} : vector<16x32xbf16>, vector<32x8xbf16>, vector<16x8xf32> -> vector<16x8xf32>
      %c3_149 = arith.constant 3 : index
      %c0_150 = arith.constant 0 : index
      %c0_151 = arith.constant 0 : index
      %217 = vector.load %arg10[%c3_149, %c0_150, %c0_151] : memref<8x1x8xf32, #tpu.memory_space<vmem>>, vector<1x1x8xf32>
      %218 = vector.shape_cast %217 : vector<1x1x8xf32> to vector<1x8xf32>
      %219 = vector.broadcast %218 : vector<1x8xf32> to vector<16x8xf32>
      %220 = arith.addf %216, %219 : vector<16x8xf32>
      %221 = arith.truncf %220 : vector<16x8xf32> to vector<16x8xbf16>
      %c3_152 = arith.constant 3 : index
      %c0_153 = arith.constant 0 : index
      %c0_154 = arith.constant 0 : index
      %222 = vector.load %arg15[%c3_152, %c0_153, %c0_154] : memref<8x16x8xbf16, #tpu.memory_space<vmem>>, vector<1x16x8xbf16>
      %223 = vector.shape_cast %222 : vector<1x16x8xbf16> to vector<16x8xbf16>
      %224 = vector.shape_cast %221 : vector<16x8xbf16> to vector<1x16x8xbf16>
      tpu.vector_store %arg15[%c3_152, %c0_153, %c0_154], %224 {strides = array<i32>} : memref<8x16x8xbf16, #tpu.memory_space<vmem>>, vector<1x16x8xbf16>,
      %c4_155 = arith.constant 4 : index
      %c0_156 = arith.constant 0 : index
      %c0_157 = arith.constant 0 : index
      %225 = vector.load %arg9[%c4_155, %c0_156, %c0_157] : memref<8x32x8xbf16, #tpu.memory_space<vmem>>, vector<1x32x8xbf16>
      %226 = vector.shape_cast %225 : vector<1x32x8xbf16> to vector<32x8xbf16>
      %cst_158 = arith.constant dense<0.000000e+00> : vector<16x8xf32>
      %227 = tpu.matmul %180, %226, %cst_158 {dimension_numbers = #tpu.dot_dimension_numbers<[1], [0], [0], [1], [0, 0, 1, 1], [], []>} : vector<16x32xbf16>, vector<32x8xbf16>, vector<16x8xf32> -> vector<16x8xf32>
      %c4_159 = arith.constant 4 : index
      %c0_160 = arith.constant 0 : index
      %c0_161 = arith.constant 0 : index
      %228 = vector.load %arg10[%c4_159, %c0_160, %c0_161] : memref<8x1x8xf32, #tpu.memory_space<vmem>>, vector<1x1x8xf32>
      %229 = vector.shape_cast %228 : vector<1x1x8xf32> to vector<1x8xf32>
      %230 = vector.broadcast %229 : vector<1x8xf32> to vector<16x8xf32>
      %231 = arith.addf %227, %230 : vector<16x8xf32>
      %232 = arith.truncf %231 : vector<16x8xf32> to vector<16x8xbf16>
      %c4_162 = arith.constant 4 : index
      %c0_163 = arith.constant 0 : index
      %c0_164 = arith.constant 0 : index
      %233 = vector.load %arg15[%c4_162, %c0_163, %c0_164] : memref<8x16x8xbf16, #tpu.memory_space<vmem>>, vector<1x16x8xbf16>
      %234 = vector.shape_cast %233 : vector<1x16x8xbf16> to vector<16x8xbf16>
      %235 = vector.shape_cast %232 : vector<16x8xbf16> to vector<1x16x8xbf16>
      tpu.vector_store %arg15[%c4_162, %c0_163, %c0_164], %235 {strides = array<i32>} : memref<8x16x8xbf16, #tpu.memory_space<vmem>>, vector<1x16x8xbf16>,
      %c5_165 = arith.constant 5 : index
      %c0_166 = arith.constant 0 : index
      %c0_167 = arith.constant 0 : index
      %236 = vector.load %arg9[%c5_165, %c0_166, %c0_167] : memref<8x32x8xbf16, #tpu.memory_space<vmem>>, vector<1x32x8xbf16>
      %237 = vector.shape_cast %236 : vector<1x32x8xbf16> to vector<32x8xbf16>
      %cst_168 = arith.constant dense<0.000000e+00> : vector<16x8xf32>
      %238 = tpu.matmul %180, %237, %cst_168 {dimension_numbers = #tpu.dot_dimension_numbers<[1], [0], [0], [1], [0, 0, 1, 1], [], []>} : vector<16x32xbf16>, vector<32x8xbf16>, vector<16x8xf32> -> vector<16x8xf32>
      %c5_169 = arith.constant 5 : index
      %c0_170 = arith.constant 0 : index
      %c0_171 = arith.constant 0 : index
      %239 = vector.load %arg10[%c5_169, %c0_170, %c0_171] : memref<8x1x8xf32, #tpu.memory_space<vmem>>, vector<1x1x8xf32>
      %240 = vector.shape_cast %239 : vector<1x1x8xf32> to vector<1x8xf32>
      %241 = vector.broadcast %240 : vector<1x8xf32> to vector<16x8xf32>
      %242 = arith.addf %238, %241 : vector<16x8xf32>
      %243 = arith.truncf %242 : vector<16x8xf32> to vector<16x8xbf16>
      %c5_172 = arith.constant 5 : index
      %c0_173 = arith.constant 0 : index
      %c0_174 = arith.constant 0 : index
      %244 = vector.load %arg15[%c5_172, %c0_173, %c0_174] : memref<8x16x8xbf16, #tpu.memory_space<vmem>>, vector<1x16x8xbf16>
      %245 = vector.shape_cast %244 : vector<1x16x8xbf16> to vector<16x8xbf16>
      %246 = vector.shape_cast %243 : vector<16x8xbf16> to vector<1x16x8xbf16>
      tpu.vector_store %arg15[%c5_172, %c0_173, %c0_174], %246 {strides = array<i32>} : memref<8x16x8xbf16, #tpu.memory_space<vmem>>, vector<1x16x8xbf16>,
      %c6_175 = arith.constant 6 : index
      %c0_176 = arith.constant 0 : index
      %c0_177 = arith.constant 0 : index
      %247 = vector.load %arg9[%c6_175, %c0_176, %c0_177] : memref<8x32x8xbf16, #tpu.memory_space<vmem>>, vector<1x32x8xbf16>
      %248 = vector.shape_cast %247 : vector<1x32x8xbf16> to vector<32x8xbf16>
      %cst_178 = arith.constant dense<0.000000e+00> : vector<16x8xf32>
      %249 = tpu.matmul %180, %248, %cst_178 {dimension_numbers = #tpu.dot_dimension_numbers<[1], [0], [0], [1], [0, 0, 1, 1], [], []>} : vector<16x32xbf16>, vector<32x8xbf16>, vector<16x8xf32> -> vector<16x8xf32>
      %c6_179 = arith.constant 6 : index
      %c0_180 = arith.constant 0 : index
      %c0_181 = arith.constant 0 : index
      %250 = vector.load %arg10[%c6_179, %c0_180, %c0_181] : memref<8x1x8xf32, #tpu.memory_space<vmem>>, vector<1x1x8xf32>
      %251 = vector.shape_cast %250 : vector<1x1x8xf32> to vector<1x8xf32>
      %252 = vector.broadcast %251 : vector<1x8xf32> to vector<16x8xf32>
      %253 = arith.addf %249, %252 : vector<16x8xf32>
      %254 = arith.truncf %253 : vector<16x8xf32> to vector<16x8xbf16>
      %c6_182 = arith.constant 6 : index
      %c0_183 = arith.constant 0 : index
      %c0_184 = arith.constant 0 : index
      %255 = vector.load %arg15[%c6_182, %c0_183, %c0_184] : memref<8x16x8xbf16, #tpu.memory_space<vmem>>, vector<1x16x8xbf16>
      %256 = vector.shape_cast %255 : vector<1x16x8xbf16> to vector<16x8xbf16>
      %257 = vector.shape_cast %254 : vector<16x8xbf16> to vector<1x16x8xbf16>
      tpu.vector_store %arg15[%c6_182, %c0_183, %c0_184], %257 {strides = array<i32>} : memref<8x16x8xbf16, #tpu.memory_space<vmem>>, vector<1x16x8xbf16>,
      %c7_185 = arith.constant 7 : index
      %c0_186 = arith.constant 0 : index
      %c0_187 = arith.constant 0 : index
      %258 = vector.load %arg9[%c7_185, %c0_186, %c0_187] : memref<8x32x8xbf16, #tpu.memory_space<vmem>>, vector<1x32x8xbf16>
      %259 = vector.shape_cast %258 : vector<1x32x8xbf16> to vector<32x8xbf16>
      %cst_188 = arith.constant dense<0.000000e+00> : vector<16x8xf32>
      %260 = tpu.matmul %180, %259, %cst_188 {dimension_numbers = #tpu.dot_dimension_numbers<[1], [0], [0], [1], [0, 0, 1, 1], [], []>} : vector<16x32xbf16>, vector<32x8xbf16>, vector<16x8xf32> -> vector<16x8xf32>
      %c7_189 = arith.constant 7 : index
      %c0_190 = arith.constant 0 : index
      %c0_191 = arith.constant 0 : index
      %261 = vector.load %arg10[%c7_189, %c0_190, %c0_191] : memref<8x1x8xf32, #tpu.memory_space<vmem>>, vector<1x1x8xf32>
      %262 = vector.shape_cast %261 : vector<1x1x8xf32> to vector<1x8xf32>
      %263 = vector.broadcast %262 : vector<1x8xf32> to vector<16x8xf32>
      %264 = arith.addf %260, %263 : vector<16x8xf32>
      %265 = arith.truncf %264 : vector<16x8xf32> to vector<16x8xbf16>
      %c7_192 = arith.constant 7 : index
      %c0_193 = arith.constant 0 : index
      %c0_194 = arith.constant 0 : index
      %266 = vector.load %arg15[%c7_192, %c0_193, %c0_194] : memref<8x16x8xbf16, #tpu.memory_space<vmem>>, vector<1x16x8xbf16>
      %267 = vector.shape_cast %266 : vector<1x16x8xbf16> to vector<16x8xbf16>
      %268 = vector.shape_cast %265 : vector<16x8xbf16> to vector<1x16x8xbf16>
      tpu.vector_store %arg15[%c7_192, %c0_193, %c0_194], %268 {strides = array<i32>} : memref<8x16x8xbf16, #tpu.memory_space<vmem>>, vector<1x16x8xbf16>,
    } else {
    }
    %c0 = arith.constant 0 : index
    %c0_1 = arith.constant 0 : index
    %c0_2 = arith.constant 0 : index
    %3 = vector.load %arg2[%c0, %c0_1, %c0_2] : memref<1x8x32xf32, #tpu.memory_space<vmem>>, vector<1x8x32xf32>
    %4 = vector.shape_cast %3 : vector<1x8x32xf32> to vector<8x32xf32>
    %c0_3 = arith.constant 0 : index
    %c0_4 = arith.constant 0 : index
    %5 = vector.load %arg5[%c0_3, %c0_4] : memref<1x32xf32, #tpu.memory_space<vmem>>, vector<1x32xf32>
    %c0_5 = arith.constant 0 : index
    %c0_6 = arith.constant 0 : index
    %6 = vector.load %arg6[%c0_5, %c0_6] : memref<1x32xf32, #tpu.memory_space<vmem>>, vector<1x32xf32>
    %cst = arith.constant dense<0.000000e+00> : vector<8xf32>
    %7 = vector.multi_reduction <add>, %4, %cst [1] : vector<8x32xf32> to vector<8xf32>
    %8 = vector.shape_cast %7 : vector<8xf32> to vector<8x1xf32>
    %cst_7 = arith.constant 3.200000e+01 : f32
    %9 = vector.broadcast %cst_7 : f32 to vector<8x1xf32>
    %10 = arith.divf %8, %9 : vector<8x1xf32>
    %11 = vector.broadcast %10 : vector<8x1xf32> to vector<8x32xf32>
    %12 = arith.subf %4, %11 : vector<8x32xf32>
    %13 = arith.mulf %12, %12 : vector<8x32xf32>
    %cst_8 = arith.constant dense<0.000000e+00> : vector<8xf32>
    %14 = vector.multi_reduction <add>, %13, %cst_8 [1] : vector<8x32xf32> to vector<8xf32>
    %15 = vector.shape_cast %14 : vector<8xf32> to vector<8x1xf32>
    %cst_9 = arith.constant 3.200000e+01 : f32
    %16 = vector.broadcast %cst_9 : f32 to vector<8x1xf32>
    %17 = arith.divf %15, %16 : vector<8x1xf32>
    %18 = vector.broadcast %10 : vector<8x1xf32> to vector<8x32xf32>
    %19 = arith.subf %4, %18 : vector<8x32xf32>
    %cst_10 = arith.constant 9.99999974E-6 : f32
    %20 = vector.broadcast %cst_10 : f32 to vector<8x1xf32>
    %21 = arith.addf %17, %20 : vector<8x1xf32>
    %22 = math.rsqrt %21 : vector<8x1xf32>
    %23 = vector.broadcast %22 : vector<8x1xf32> to vector<8x32xf32>
    %24 = arith.mulf %19, %23 : vector<8x32xf32>
    %25 = vector.broadcast %5 : vector<1x32xf32> to vector<8x32xf32>
    %26 = arith.mulf %24, %25 : vector<8x32xf32>
    %27 = vector.broadcast %6 : vector<1x32xf32> to vector<8x32xf32>
    %28 = arith.addf %26, %27 : vector<8x32xf32>
    %29 = arith.truncf %28 : vector<8x32xf32> to vector<8x32xbf16>
    %c0_11 = arith.constant 0 : index
    %c0_12 = arith.constant 0 : index
    %c0_13 = arith.constant 0 : index
    %30 = vector.load %arg4[%c0_11, %c0_12, %c0_13] : memref<1x1x16xf32, #tpu.memory_space<vmem>>, vector<1x1x16xf32>
    %31 = vector.shape_cast %30 : vector<1x1x16xf32> to vector<1x16xf32>
    %c0_14 = arith.constant 0 : index
    %c0_15 = arith.constant 0 : index
    %32 = vector.load %arg12[%c0_14, %c0_15] : memref<1x32xf32, #tpu.memory_space<vmem>>, vector<1x32xf32>
    %33 = vector.broadcast %32 : vector<1x32xf32> to vector<8x32xf32>
    %34 = arith.addf %4, %33 : vector<8x32xf32>
    %c0_16 = arith.constant 0 : index
    %c0_17 = arith.constant 0 : index
    %c0_18 = arith.constant 0 : index
    %35 = vector.load %arg7[%c0_16, %c0_17, %c0_18] : memref<4x32x8xbf16, #tpu.memory_space<vmem>>, vector<1x32x8xbf16>
    %36 = vector.shape_cast %35 : vector<1x32x8xbf16> to vector<32x8xbf16>
    %cst_19 = arith.constant dense<0.000000e+00> : vector<8x8xf32>
    %37 = tpu.matmul %29, %36, %cst_19 {dimension_numbers = #tpu.dot_dimension_numbers<[1], [0], [0], [1], [0, 0, 1, 1], [], []>} : vector<8x32xbf16>, vector<32x8xbf16>, vector<8x8xf32> -> vector<8x8xf32>
    %c0_20 = arith.constant 0 : index
    %c0_21 = arith.constant 0 : index
    %c0_22 = arith.constant 0 : index
    %38 = vector.load %arg8[%c0_20, %c0_21, %c0_22] : memref<4x1x8xf32, #tpu.memory_space<vmem>>, vector<1x1x8xf32>
    %39 = vector.shape_cast %38 : vector<1x1x8xf32> to vector<1x8xf32>
    %40 = vector.broadcast %39 : vector<1x8xf32> to vector<8x8xf32>
    %41 = arith.addf %37, %40 : vector<8x8xf32>
    %42 = arith.truncf %41 : vector<8x8xf32> to vector<8x8xbf16>
    %c0_23 = arith.constant 0 : index
    %c0_24 = arith.constant 0 : index
    %c0_25 = arith.constant 0 : index
    %43 = vector.load %arg15[%c0_23, %c0_24, %c0_25] : memref<8x16x8xbf16, #tpu.memory_space<vmem>>, vector<1x16x8xbf16>
    %44 = vector.shape_cast %43 : vector<1x16x8xbf16> to vector<16x8xbf16>
    %c4 = arith.constant 4 : index
    %c0_26 = arith.constant 0 : index
    %c0_27 = arith.constant 0 : index
    %45 = vector.load %arg15[%c4, %c0_26, %c0_27] : memref<8x16x8xbf16, #tpu.memory_space<vmem>>, vector<1x16x8xbf16>
    %46 = vector.shape_cast %45 : vector<1x16x8xbf16> to vector<16x8xbf16>
    "tpu.trace_start"() <{level = 10 : i32, message = "qd,kd->qk"}> : () -> ()
    %cst_28 = arith.constant dense<0.000000e+00> : vector<8x16xf32>
    %47 = tpu.matmul %42, %44, %cst_28 {dimension_numbers = #tpu.dot_dimension_numbers<[1], [1], [0], [0], [0, 0, 1, 0], [], []>} : vector<8x8xbf16>, vector<16x8xbf16>, vector<8x16xf32> -> vector<8x16xf32>
    "tpu.trace_stop"() : () -> ()
    %48 = vector.broadcast %31 : vector<1x16xf32> to vector<8x16xf32>
    %49 = arith.addf %47, %48 : vector<8x16xf32>
    %cst_29 = arith.constant dense<0xFF800000> : vector<8xf32>
    %50 = vector.multi_reduction <maximumf>, %49, %cst_29 [1] : vector<8x16xf32> to vector<8xf32>
    %51 = vector.shape_cast %50 : vector<8xf32> to vector<8x1xf32>
    %52 = vector.broadcast %51 : vector<8x1xf32> to vector<8x16xf32>
    %53 = arith.subf %49, %52 : vector<8x16xf32>
    %54 = math.exp %53 : vector<8x16xf32>
    %cst_30 = arith.constant dense<0.000000e+00> : vector<8xf32>
    %55 = vector.multi_reduction <add>, %54, %cst_30 [1] : vector<8x16xf32> to vector<8xf32>
    %56 = vector.shape_cast %55 : vector<8xf32> to vector<8x1xf32>
    %57 = tpu.reciprocal %56 {approx = true} : vector<8x1xf32> -> vector<8x1xf32>
    %58 = vector.broadcast %57 : vector<8x1xf32> to vector<8x16xf32>
    %59 = arith.mulf %54, %58 : vector<8x16xf32>
    %60 = arith.truncf %59 : vector<8x16xf32> to vector<8x16xbf16>
    %c0_31 = arith.constant 0 : index
    %c0_32 = arith.constant 0 : index
    %c0_33 = arith.constant 0 : index
    %c0_34 = arith.constant 0 : index
    %61 = vector.load %arg14[%c0_31, %c0_32, %c0_33, %c0_34] : memref<1x4x8x16xbf16, #tpu.memory_space<vmem>>, vector<1x1x8x16xbf16>
    %62 = vector.shape_cast %61 : vector<1x1x8x16xbf16> to vector<8x16xbf16>
    %63 = vector.shape_cast %60 : vector<8x16xbf16> to vector<1x1x8x16xbf16>
    tpu.vector_store %arg14[%c0_31, %c0_32, %c0_33, %c0_34], %63 {strides = array<i32>} : memref<1x4x8x16xbf16, #tpu.memory_space<vmem>>, vector<1x1x8x16xbf16>,
    "tpu.trace_start"() <{level = 10 : i32, message = "qk,kd->qd"}> : () -> ()
    %cst_35 = arith.constant dense<0.000000e+00> : vector<8x8xf32>
    %64 = tpu.matmul %60, %46, %cst_35 {dimension_numbers = #tpu.dot_dimension_numbers<[1], [0], [0], [1], [0, 0, 1, 1], [], []>} : vector<8x16xbf16>, vector<16x8xbf16>, vector<8x8xf32> -> vector<8x8xf32>
    "tpu.trace_stop"() : () -> ()
    %65 = arith.truncf %64 : vector<8x8xf32> to vector<8x8xbf16>
    %c0_36 = arith.constant 0 : index
    %c0_37 = arith.constant 0 : index
    %c0_38 = arith.constant 0 : index
    %66 = vector.load %arg11[%c0_36, %c0_37, %c0_38] : memref<4x8x32xbf16, #tpu.memory_space<vmem>>, vector<1x8x32xbf16>
    %67 = vector.shape_cast %66 : vector<1x8x32xbf16> to vector<8x32xbf16>
    %cst_39 = arith.constant dense<0.000000e+00> : vector<8x32xf32>
    %68 = tpu.matmul %65, %67, %cst_39 {dimension_numbers = #tpu.dot_dimension_numbers<[1], [0], [0], [1], [0, 0, 1, 1], [], []>} : vector<8x8xbf16>, vector<8x32xbf16>, vector<8x32xf32> -> vector<8x32xf32>
    %69 = arith.addf %34, %68 : vector<8x32xf32>
    %c1 = arith.constant 1 : index
    %c0_40 = arith.constant 0 : index
    %c0_41 = arith.constant 0 : index
    %70 = vector.load %arg7[%c1, %c0_40, %c0_41] : memref<4x32x8xbf16, #tpu.memory_space<vmem>>, vector<1x32x8xbf16>
    %71 = vector.shape_cast %70 : vector<1x32x8xbf16> to vector<32x8xbf16>
    %cst_42 = arith.constant dense<0.000000e+00> : vector<8x8xf32>
    %72 = tpu.matmul %29, %71, %cst_42 {dimension_numbers = #tpu.dot_dimension_numbers<[1], [0], [0], [1], [0, 0, 1, 1], [], []>} : vector<8x32xbf16>, vector<32x8xbf16>, vector<8x8xf32> -> vector<8x8xf32>
    %c1_43 = arith.constant 1 : index
    %c0_44 = arith.constant 0 : index
    %c0_45 = arith.constant 0 : index
    %73 = vector.load %arg8[%c1_43, %c0_44, %c0_45] : memref<4x1x8xf32, #tpu.memory_space<vmem>>, vector<1x1x8xf32>
    %74 = vector.shape_cast %73 : vector<1x1x8xf32> to vector<1x8xf32>
    %75 = vector.broadcast %74 : vector<1x8xf32> to vector<8x8xf32>
    %76 = arith.addf %72, %75 : vector<8x8xf32>
    %77 = arith.truncf %76 : vector<8x8xf32> to vector<8x8xbf16>
    %c1_46 = arith.constant 1 : index
    %c0_47 = arith.constant 0 : index
    %c0_48 = arith.constant 0 : index
    %78 = vector.load %arg15[%c1_46, %c0_47, %c0_48] : memref<8x16x8xbf16, #tpu.memory_space<vmem>>, vector<1x16x8xbf16>
    %79 = vector.shape_cast %78 : vector<1x16x8xbf16> to vector<16x8xbf16>
    %c5 = arith.constant 5 : index
    %c0_49 = arith.constant 0 : index
    %c0_50 = arith.constant 0 : index
    %80 = vector.load %arg15[%c5, %c0_49, %c0_50] : memref<8x16x8xbf16, #tpu.memory_space<vmem>>, vector<1x16x8xbf16>
    %81 = vector.shape_cast %80 : vector<1x16x8xbf16> to vector<16x8xbf16>
    "tpu.trace_start"() <{level = 10 : i32, message = "qd,kd->qk"}> : () -> ()
    %cst_51 = arith.constant dense<0.000000e+00> : vector<8x16xf32>
    %82 = tpu.matmul %77, %79, %cst_51 {dimension_numbers = #tpu.dot_dimension_numbers<[1], [1], [0], [0], [0, 0, 1, 0], [], []>} : vector<8x8xbf16>, vector<16x8xbf16>, vector<8x16xf32> -> vector<8x16xf32>
    "tpu.trace_stop"() : () -> ()
    %83 = vector.broadcast %31 : vector<1x16xf32> to vector<8x16xf32>
    %84 = arith.addf %82, %83 : vector<8x16xf32>
    %cst_52 = arith.constant dense<0xFF800000> : vector<8xf32>
    %85 = vector.multi_reduction <maximumf>, %84, %cst_52 [1] : vector<8x16xf32> to vector<8xf32>
    %86 = vector.shape_cast %85 : vector<8xf32> to vector<8x1xf32>
    %87 = vector.broadcast %86 : vector<8x1xf32> to vector<8x16xf32>
    %88 = arith.subf %84, %87 : vector<8x16xf32>
    %89 = math.exp %88 : vector<8x16xf32>
    %cst_53 = arith.constant dense<0.000000e+00> : vector<8xf32>
    %90 = vector.multi_reduction <add>, %89, %cst_53 [1] : vector<8x16xf32> to vector<8xf32>
    %91 = vector.shape_cast %90 : vector<8xf32> to vector<8x1xf32>
    %92 = tpu.reciprocal %91 {approx = true} : vector<8x1xf32> -> vector<8x1xf32>
    %93 = vector.broadcast %92 : vector<8x1xf32> to vector<8x16xf32>
    %94 = arith.mulf %89, %93 : vector<8x16xf32>
    %95 = arith.truncf %94 : vector<8x16xf32> to vector<8x16xbf16>
    %c0_54 = arith.constant 0 : index
    %c1_55 = arith.constant 1 : index
    %c0_56 = arith.constant 0 : index
    %c0_57 = arith.constant 0 : index
    %96 = vector.load %arg14[%c0_54, %c1_55, %c0_56, %c0_57] : memref<1x4x8x16xbf16, #tpu.memory_space<vmem>>, vector<1x1x8x16xbf16>
    %97 = vector.shape_cast %96 : vector<1x1x8x16xbf16> to vector<8x16xbf16>
    %98 = vector.shape_cast %95 : vector<8x16xbf16> to vector<1x1x8x16xbf16>
    tpu.vector_store %arg14[%c0_54, %c1_55, %c0_56, %c0_57], %98 {strides = array<i32>} : memref<1x4x8x16xbf16, #tpu.memory_space<vmem>>, vector<1x1x8x16xbf16>,
    "tpu.trace_start"() <{level = 10 : i32, message = "qk,kd->qd"}> : () -> ()
    %cst_58 = arith.constant dense<0.000000e+00> : vector<8x8xf32>
    %99 = tpu.matmul %95, %81, %cst_58 {dimension_numbers = #tpu.dot_dimension_numbers<[1], [0], [0], [1], [0, 0, 1, 1], [], []>} : vector<8x16xbf16>, vector<16x8xbf16>, vector<8x8xf32> -> vector<8x8xf32>
    "tpu.trace_stop"() : () -> ()
    %100 = arith.truncf %99 : vector<8x8xf32> to vector<8x8xbf16>
    %c1_59 = arith.constant 1 : index
    %c0_60 = arith.constant 0 : index
    %c0_61 = arith.constant 0 : index
    %101 = vector.load %arg11[%c1_59, %c0_60, %c0_61] : memref<4x8x32xbf16, #tpu.memory_space<vmem>>, vector<1x8x32xbf16>
    %102 = vector.shape_cast %101 : vector<1x8x32xbf16> to vector<8x32xbf16>
    %cst_62 = arith.constant dense<0.000000e+00> : vector<8x32xf32>
    %103 = tpu.matmul %100, %102, %cst_62 {dimension_numbers = #tpu.dot_dimension_numbers<[1], [0], [0], [1], [0, 0, 1, 1], [], []>} : vector<8x8xbf16>, vector<8x32xbf16>, vector<8x32xf32> -> vector<8x32xf32>
    %104 = arith.addf %69, %103 : vector<8x32xf32>
    %c2 = arith.constant 2 : index
    %c0_63 = arith.constant 0 : index
    %c0_64 = arith.constant 0 : index
    %105 = vector.load %arg7[%c2, %c0_63, %c0_64] : memref<4x32x8xbf16, #tpu.memory_space<vmem>>, vector<1x32x8xbf16>
    %106 = vector.shape_cast %105 : vector<1x32x8xbf16> to vector<32x8xbf16>
    %cst_65 = arith.constant dense<0.000000e+00> : vector<8x8xf32>
    %107 = tpu.matmul %29, %106, %cst_65 {dimension_numbers = #tpu.dot_dimension_numbers<[1], [0], [0], [1], [0, 0, 1, 1], [], []>} : vector<8x32xbf16>, vector<32x8xbf16>, vector<8x8xf32> -> vector<8x8xf32>
    %c2_66 = arith.constant 2 : index
    %c0_67 = arith.constant 0 : index
    %c0_68 = arith.constant 0 : index
    %108 = vector.load %arg8[%c2_66, %c0_67, %c0_68] : memref<4x1x8xf32, #tpu.memory_space<vmem>>, vector<1x1x8xf32>
    %109 = vector.shape_cast %108 : vector<1x1x8xf32> to vector<1x8xf32>
    %110 = vector.broadcast %109 : vector<1x8xf32> to vector<8x8xf32>
    %111 = arith.addf %107, %110 : vector<8x8xf32>
    %112 = arith.truncf %111 : vector<8x8xf32> to vector<8x8xbf16>
    %c2_69 = arith.constant 2 : index
    %c0_70 = arith.constant 0 : index
    %c0_71 = arith.constant 0 : index
    %113 = vector.load %arg15[%c2_69, %c0_70, %c0_71] : memref<8x16x8xbf16, #tpu.memory_space<vmem>>, vector<1x16x8xbf16>
    %114 = vector.shape_cast %113 : vector<1x16x8xbf16> to vector<16x8xbf16>
    %c6 = arith.constant 6 : index
    %c0_72 = arith.constant 0 : index
    %c0_73 = arith.constant 0 : index
    %115 = vector.load %arg15[%c6, %c0_72, %c0_73] : memref<8x16x8xbf16, #tpu.memory_space<vmem>>, vector<1x16x8xbf16>
    %116 = vector.shape_cast %115 : vector<1x16x8xbf16> to vector<16x8xbf16>
    "tpu.trace_start"() <{level = 10 : i32, message = "qd,kd->qk"}> : () -> ()
    %cst_74 = arith.constant dense<0.000000e+00> : vector<8x16xf32>
    %117 = tpu.matmul %112, %114, %cst_74 {dimension_numbers = #tpu.dot_dimension_numbers<[1], [1], [0], [0], [0, 0, 1, 0], [], []>} : vector<8x8xbf16>, vector<16x8xbf16>, vector<8x16xf32> -> vector<8x16xf32>
    "tpu.trace_stop"() : () -> ()
    %118 = vector.broadcast %31 : vector<1x16xf32> to vector<8x16xf32>
    %119 = arith.addf %117, %118 : vector<8x16xf32>
    %cst_75 = arith.constant dense<0xFF800000> : vector<8xf32>
    %120 = vector.multi_reduction <maximumf>, %119, %cst_75 [1] : vector<8x16xf32> to vector<8xf32>
    %121 = vector.shape_cast %120 : vector<8xf32> to vector<8x1xf32>
    %122 = vector.broadcast %121 : vector<8x1xf32> to vector<8x16xf32>
    %123 = arith.subf %119, %122 : vector<8x16xf32>
    %124 = math.exp %123 : vector<8x16xf32>
    %cst_76 = arith.constant dense<0.000000e+00> : vector<8xf32>
    %125 = vector.multi_reduction <add>, %124, %cst_76 [1] : vector<8x16xf32> to vector<8xf32>
    %126 = vector.shape_cast %125 : vector<8xf32> to vector<8x1xf32>
    %127 = tpu.reciprocal %126 {approx = true} : vector<8x1xf32> -> vector<8x1xf32>
    %128 = vector.broadcast %127 : vector<8x1xf32> to vector<8x16xf32>
    %129 = arith.mulf %124, %128 : vector<8x16xf32>
    %130 = arith.truncf %129 : vector<8x16xf32> to vector<8x16xbf16>
    %c0_77 = arith.constant 0 : index
    %c2_78 = arith.constant 2 : index
    %c0_79 = arith.constant 0 : index
    %c0_80 = arith.constant 0 : index
    %131 = vector.load %arg14[%c0_77, %c2_78, %c0_79, %c0_80] : memref<1x4x8x16xbf16, #tpu.memory_space<vmem>>, vector<1x1x8x16xbf16>
    %132 = vector.shape_cast %131 : vector<1x1x8x16xbf16> to vector<8x16xbf16>
    %133 = vector.shape_cast %130 : vector<8x16xbf16> to vector<1x1x8x16xbf16>
    tpu.vector_store %arg14[%c0_77, %c2_78, %c0_79, %c0_80], %133 {strides = array<i32>} : memref<1x4x8x16xbf16, #tpu.memory_space<vmem>>, vector<1x1x8x16xbf16>,
    "tpu.trace_start"() <{level = 10 : i32, message = "qk,kd->qd"}> : () -> ()
    %cst_81 = arith.constant dense<0.000000e+00> : vector<8x8xf32>
    %134 = tpu.matmul %130, %116, %cst_81 {dimension_numbers = #tpu.dot_dimension_numbers<[1], [0], [0], [1], [0, 0, 1, 1], [], []>} : vector<8x16xbf16>, vector<16x8xbf16>, vector<8x8xf32> -> vector<8x8xf32>
    "tpu.trace_stop"() : () -> ()
    %135 = arith.truncf %134 : vector<8x8xf32> to vector<8x8xbf16>
    %c2_82 = arith.constant 2 : index
    %c0_83 = arith.constant 0 : index
    %c0_84 = arith.constant 0 : index
    %136 = vector.load %arg11[%c2_82, %c0_83, %c0_84] : memref<4x8x32xbf16, #tpu.memory_space<vmem>>, vector<1x8x32xbf16>
    %137 = vector.shape_cast %136 : vector<1x8x32xbf16> to vector<8x32xbf16>
    %cst_85 = arith.constant dense<0.000000e+00> : vector<8x32xf32>
    %138 = tpu.matmul %135, %137, %cst_85 {dimension_numbers = #tpu.dot_dimension_numbers<[1], [0], [0], [1], [0, 0, 1, 1], [], []>} : vector<8x8xbf16>, vector<8x32xbf16>, vector<8x32xf32> -> vector<8x32xf32>
    %139 = arith.addf %104, %138 : vector<8x32xf32>
    %c3 = arith.constant 3 : index
    %c0_86 = arith.constant 0 : index
    %c0_87 = arith.constant 0 : index
    %140 = vector.load %arg7[%c3, %c0_86, %c0_87] : memref<4x32x8xbf16, #tpu.memory_space<vmem>>, vector<1x32x8xbf16>
    %141 = vector.shape_cast %140 : vector<1x32x8xbf16> to vector<32x8xbf16>
    %cst_88 = arith.constant dense<0.000000e+00> : vector<8x8xf32>
    %142 = tpu.matmul %29, %141, %cst_88 {dimension_numbers = #tpu.dot_dimension_numbers<[1], [0], [0], [1], [0, 0, 1, 1], [], []>} : vector<8x32xbf16>, vector<32x8xbf16>, vector<8x8xf32> -> vector<8x8xf32>
    %c3_89 = arith.constant 3 : index
    %c0_90 = arith.constant 0 : index
    %c0_91 = arith.constant 0 : index
    %143 = vector.load %arg8[%c3_89, %c0_90, %c0_91] : memref<4x1x8xf32, #tpu.memory_space<vmem>>, vector<1x1x8xf32>
    %144 = vector.shape_cast %143 : vector<1x1x8xf32> to vector<1x8xf32>
    %145 = vector.broadcast %144 : vector<1x8xf32> to vector<8x8xf32>
    %146 = arith.addf %142, %145 : vector<8x8xf32>
    %147 = arith.truncf %146 : vector<8x8xf32> to vector<8x8xbf16>
    %c3_92 = arith.constant 3 : index
    %c0_93 = arith.constant 0 : index
    %c0_94 = arith.constant 0 : index
    %148 = vector.load %arg15[%c3_92, %c0_93, %c0_94] : memref<8x16x8xbf16, #tpu.memory_space<vmem>>, vector<1x16x8xbf16>
    %149 = vector.shape_cast %148 : vector<1x16x8xbf16> to vector<16x8xbf16>
    %c7 = arith.constant 7 : index
    %c0_95 = arith.constant 0 : index
    %c0_96 = arith.constant 0 : index
    %150 = vector.load %arg15[%c7, %c0_95, %c0_96] : memref<8x16x8xbf16, #tpu.memory_space<vmem>>, vector<1x16x8xbf16>
    %151 = vector.shape_cast %150 : vector<1x16x8xbf16> to vector<16x8xbf16>
    "tpu.trace_start"() <{level = 10 : i32, message = "qd,kd->qk"}> : () -> ()
    %cst_97 = arith.constant dense<0.000000e+00> : vector<8x16xf32>
    %152 = tpu.matmul %147, %149, %cst_97 {dimension_numbers = #tpu.dot_dimension_numbers<[1], [1], [0], [0], [0, 0, 1, 0], [], []>} : vector<8x8xbf16>, vector<16x8xbf16>, vector<8x16xf32> -> vector<8x16xf32>
    "tpu.trace_stop"() : () -> ()
    %153 = vector.broadcast %31 : vector<1x16xf32> to vector<8x16xf32>
    %154 = arith.addf %152, %153 : vector<8x16xf32>
    %cst_98 = arith.constant dense<0xFF800000> : vector<8xf32>
    %155 = vector.multi_reduction <maximumf>, %154, %cst_98 [1] : vector<8x16xf32> to vector<8xf32>
    %156 = vector.shape_cast %155 : vector<8xf32> to vector<8x1xf32>
    %157 = vector.broadcast %156 : vector<8x1xf32> to vector<8x16xf32>
    %158 = arith.subf %154, %157 : vector<8x16xf32>
    %159 = math.exp %158 : vector<8x16xf32>
    %cst_99 = arith.constant dense<0.000000e+00> : vector<8xf32>
    %160 = vector.multi_reduction <add>, %159, %cst_99 [1] : vector<8x16xf32> to vector<8xf32>
    %161 = vector.shape_cast %160 : vector<8xf32> to vector<8x1xf32>
    %162 = tpu.reciprocal %161 {approx = true} : vector<8x1xf32> -> vector<8x1xf32>
    %163 = vector.broadcast %162 : vector<8x1xf32> to vector<8x16xf32>
    %164 = arith.mulf %159, %163 : vector<8x16xf32>
    %165 = arith.truncf %164 : vector<8x16xf32> to vector<8x16xbf16>
    %c0_100 = arith.constant 0 : index
    %c3_101 = arith.constant 3 : index
    %c0_102 = arith.constant 0 : index
    %c0_103 = arith.constant 0 : index
    %166 = vector.load %arg14[%c0_100, %c3_101, %c0_102, %c0_103] : memref<1x4x8x16xbf16, #tpu.memory_space<vmem>>, vector<1x1x8x16xbf16>
    %167 = vector.shape_cast %166 : vector<1x1x8x16xbf16> to vector<8x16xbf16>
    %168 = vector.shape_cast %165 : vector<8x16xbf16> to vector<1x1x8x16xbf16>
    tpu.vector_store %arg14[%c0_100, %c3_101, %c0_102, %c0_103], %168 {strides = array<i32>} : memref<1x4x8x16xbf16, #tpu.memory_space<vmem>>, vector<1x1x8x16xbf16>,
    "tpu.trace_start"() <{level = 10 : i32, message = "qk,kd->qd"}> : () -> ()
    %cst_104 = arith.constant dense<0.000000e+00> : vector<8x8xf32>
    %169 = tpu.matmul %165, %151, %cst_104 {dimension_numbers = #tpu.dot_dimension_numbers<[1], [0], [0], [1], [0, 0, 1, 1], [], []>} : vector<8x16xbf16>, vector<16x8xbf16>, vector<8x8xf32> -> vector<8x8xf32>
    "tpu.trace_stop"() : () -> ()
    %170 = arith.truncf %169 : vector<8x8xf32> to vector<8x8xbf16>
    %c3_105 = arith.constant 3 : index
    %c0_106 = arith.constant 0 : index
    %c0_107 = arith.constant 0 : index
    %171 = vector.load %arg11[%c3_105, %c0_106, %c0_107] : memref<4x8x32xbf16, #tpu.memory_space<vmem>>, vector<1x8x32xbf16>
    %172 = vector.shape_cast %171 : vector<1x8x32xbf16> to vector<8x32xbf16>
    %cst_108 = arith.constant dense<0.000000e+00> : vector<8x32xf32>
    %173 = tpu.matmul %170, %172, %cst_108 {dimension_numbers = #tpu.dot_dimension_numbers<[1], [0], [0], [1], [0, 0, 1, 1], [], []>} : vector<8x8xbf16>, vector<8x32xbf16>, vector<8x32xf32> -> vector<8x32xf32>
    %174 = arith.addf %139, %173 : vector<8x32xf32>
    %c0_109 = arith.constant 0 : index
    %c0_110 = arith.constant 0 : index
    %c0_111 = arith.constant 0 : index
    %175 = vector.load %arg13[%c0_109, %c0_110, %c0_111] : memref<1x8x32xf32, #tpu.memory_space<vmem>>, vector<1x8x32xf32>
    %176 = vector.shape_cast %175 : vector<1x8x32xf32> to vector<8x32xf32>
    %177 = vector.shape_cast %174 : vector<8x32xf32> to vector<1x8x32xf32>
    tpu.vector_store %arg13[%c0_109, %c0_110, %c0_111], %177 {strides = array<i32>} : memref<1x8x32xf32, #tpu.memory_space<vmem>>, vector<1x8x32xf32>,
    return
  }
  func.func @transform_0(%arg0: i32, %arg1: i32) -> (i32, i32, i32) {
    %c0_i32 = arith.constant 0 : i32
    %c0_i32_0 = arith.constant 0 : i32
    return %arg0, %arg1, %c0_i32 : i32, i32, i32
  }
  func.func @transform_1(%arg0: i32, %arg1: i32) -> (i32, i32, i32) {
    %c0_i32 = arith.constant 0 : i32
    %c0_i32_0 = arith.constant 0 : i32
    %c0_i32_1 = arith.constant 0 : i32
    return %arg0, %c0_i32, %c0_i32_0 : i32, i32, i32
  }
  func.func @transform_2(%arg0: i32, %arg1: i32) -> (i32, i32, i32) {
    %c0_i32 = arith.constant 0 : i32
    %c0_i32_0 = arith.constant 0 : i32
    %c0_i32_1 = arith.constant 0 : i32
    return %arg0, %c0_i32, %c0_i32_0 : i32, i32, i32
  }
  func.func @transform_3(%arg0: i32, %arg1: i32) -> (i32, i32) {
    %c0_i32 = arith.constant 0 : i32
    %c0_i32_0 = arith.constant 0 : i32
    %c0_i32_1 = arith.constant 0 : i32
    return %c0_i32, %c0_i32_0 : i32, i32
  }
  func.func @transform_4(%arg0: i32, %arg1: i32) -> (i32, i32) {
    %c0_i32 = arith.constant 0 : i32
    %c0_i32_0 = arith.constant 0 : i32
    %c0_i32_1 = arith.constant 0 : i32
    return %c0_i32, %c0_i32_0 : i32, i32
  }
  func.func @transform_5(%arg0: i32, %arg1: i32) -> (i32, i32, i32) {
    %c0_i32 = arith.constant 0 : i32
    %c0_i32_0 = arith.constant 0 : i32
    %c0_i32_1 = arith.constant 0 : i32
    %c0_i32_2 = arith.constant 0 : i32
    return %c0_i32, %c0_i32_0, %c0_i32_1 : i32, i32, i32
  }
  func.func @transform_6(%arg0: i32, %arg1: i32) -> (i32, i32, i32) {
    %c0_i32 = arith.constant 0 : i32
    %c0_i32_0 = arith.constant 0 : i32
    %c0_i32_1 = arith.constant 0 : i32
    %c0_i32_2 = arith.constant 0 : i32
    return %c0_i32, %c0_i32_0, %c0_i32_1 : i32, i32, i32
  }
  func.func @transform_7(%arg0: i32, %arg1: i32) -> (i32, i32, i32) {
    %c0_i32 = arith.constant 0 : i32
    %c0_i32_0 = arith.constant 0 : i32
    %c0_i32_1 = arith.constant 0 : i32
    %c0_i32_2 = arith.constant 0 : i32
    return %c0_i32, %c0_i32_0, %c0_i32_1 : i32, i32, i32
  }
  func.func @transform_8(%arg0: i32, %arg1: i32) -> (i32, i32, i32) {
    %c0_i32 = arith.constant 0 : i32
    %c0_i32_0 = arith.constant 0 : i32
    %c0_i32_1 = arith.constant 0 : i32
    %c0_i32_2 = arith.constant 0 : i32
    return %c0_i32, %c0_i32_0, %c0_i32_1 : i32, i32, i32
  }
  func.func @transform_9(%arg0: i32, %arg1: i32) -> (i32, i32, i32) {
    %c0_i32 = arith.constant 0 : i32
    %c0_i32_0 = arith.constant 0 : i32
    %c0_i32_1 = arith.constant 0 : i32
    %c0_i32_2 = arith.constant 0 : i32
    return %c0_i32, %c0_i32_0, %c0_i32_1 : i32, i32, i32
  }
  func.func @transform_10(%arg0: i32, %arg1: i32) -> (i32, i32) {
    %c0_i32 = arith.constant 0 : i32
    %c0_i32_0 = arith.constant 0 : i32
    %c0_i32_1 = arith.constant 0 : i32
    return %c0_i32, %c0_i32_0 : i32, i32
  }
  func.func @transform_11(%arg0: i32, %arg1: i32) -> (i32, i32, i32) {
    %c0_i32 = arith.constant 0 : i32
    %c0_i32_0 = arith.constant 0 : i32
    return %arg0, %arg1, %c0_i32 : i32, i32, i32
  }
  func.func @transform_12(%arg0: i32, %arg1: i32) -> (i32, i32, i32, i32) {
    %c0_i32 = arith.constant 0 : i32
    %c0_i32_0 = arith.constant 0 : i32
    %c0_i32_1 = arith.constant 0 : i32
    return %arg0, %c0_i32, %arg1, %c0_i32_0 : i32, i32, i32, i32
  }
}

</mosaic_0001>

<bundles_post_ra>
// kernel: tpu_custom_call.1
= control target key start
LH: loop header
LB: loop body
LE: loop exit
PB: predicated region body
PF: predicated region fallthrough
CT: control target
= control target key end

     0   :  { %s3444_s0 = inlined_call_operand.vmem [shape: f32[2,8,32], index: 0, kind: input, shape index: {}]   ;;  %s3445_s1 = inlined_call_operand.vmem [shape: f32[2,16,32], index: 1, kind: input, shape index: {}]   ;;  %s3446_s2 = inlined_call_operand.vmem [shape: f32[2,1,16], index: 2, kind: input, shape index: {}]   ;;  %s3447_s3 = inlined_call_operand.vmem [shape: f32[1,32], index: 3, kind: input, shape index: {}]   ;;  %s3448_s4 = inlined_call_operand.vmem [shape: f32[1,32], index: 4, kind: input, shape index: {}]   ;;  %s3449_s5 = inlined_call_operand.vmem [shape: bf16[4,32,8], index: 5, kind: input, shape index: {}]   ;;  %s3450_s6 = inlined_call_operand.vmem [shape: f32[4,1,8], index: 6, kind: input, shape index: {}]   ;;  %s3451_s7 = inlined_call_operand.vmem [shape: bf16[8,32,8], index: 7, kind: input, shape index: {}]   ;;  %s3452_s8 = inlined_call_operand.vmem [shape: f32[8,1,8], index: 8, kind: input, shape index: {}]   ;;  %s3453_s9 = inlined_call_operand.vmem [shape: bf16[4,8,32], index: 9, kind: input, shape index: {}]   ;;  %s3454_s10 = inlined_call_operand.vmem [shape: f32[1,32], index: 10, kind: input, shape index: {}]   ;;  %s3455_s11 = inlined_call_operand.hbm [shape: f32[2,8,32], index: 11, kind: output, shape index: {0}]   ;;  %s3456_s12 = inlined_call_operand.hbm [shape: bf16[2,4,8,16], index: 12, kind: output, shape index: {1}]  }
   0x1   :  { %3459 = sst [smem:[#allocation12_spill]] %s3444_s0 }
   0x2   :  { %3460 = sst [smem:[#allocation13_spill]] %s3445_s1 }
   0x3   :  { %18 = vsyncpa [#allocation4], 0 }
   0x4   :  { %20 = vsyncpa [#allocation4 + $0x1], 0 }
   0x5   :  { %21 = vsyncpa [#allocation6], 0 }
   0x6   :  { %23 = vsyncpa [#allocation6 + $0x1], 0  ;;  %s2965_s21 = smov 0   ;;  %s2967_s22 = smov 0  }
   0x7   :  { %s2969_s23 = smov 0   ;;  %s2971_s24 = smov 0  }
   0x8   :  { %s2973_s25 = smov 0   ;;  %s2975_s26 = smov 0  }
   0x9 LB: > { %3461 = sst [smem:[#allocation9_spill]] %s2888_s25  ;;  %s2265_s27 = sadd.s32 4294967295, %s2892_s26   ;;  %s2892_s26 = sphi %s2975_s26, %s29_s26   ;;  %s2888_s25 = sphi %s2973_s25, %s3471_s25   ;;  %s2884_s24 = sphi %s2971_s24, %s3470_s24   ;;  %s2880_s23 = sphi %s2969_s23, %s3474_s23   ;;  %s2876_s22 = sphi %s2967_s22, %s3473_s22   ;;  %s2872_s21 = sphi %s2965_s21, %s3472_s21  }
   0xa   : > { %s2266_s28 = sadd.s32 4294967294, %s2892_s26   ;;  %s41_s29 = sadd.s32 1, %s2888_s25 }
   0xb   : > { %s298_s30 = sadd.s32 1, %s2880_s23  ;;  %p43_p0 = scmp.ge.s32.totalorder %s41_s29, 2 }
   0xc   : > { %p308_p1 = scmp.ne.s32.totalorder %s2880_s23, %s2876_s22  ;;  %p309_p2 = scmp.eq.s32.totalorder %s2265_s27, 1 }
   0xd   : > { %p314_p3 = scmp.ne.s32.totalorder %s2876_s22, %s2872_s21  ;;  %s3476_s29 = smov (%p43_p0, %s41_s29), 0 }
   0xe   : > { %3462 = sst [smem:[#allocation10_spill]] %s3476_s29  ;;  %p3005_p4 = por %p309_p2, %p308_p1 }
   0xf   : > { %p315_p5 = scmp.eq.s32.totalorder %s2266_s28, 1  ;;  %s293_s14 = ssub.s32 %s2888_s25, %s3476_s29 }
  0x10   : > { %p2269_p6 = scmp.ge.s32.totalorder %s2892_s26, 1  ;;  %p296_p7 = scmp.eq.s32.totalorder %s293_s14, 0 }
  0x11   : > { %p3012_p8 = por %p315_p5, %p314_p3  ;;  %p409_p9 = scmp.lt.s32.totalorder %s2892_s26, 3 }
  0x12   : > { %s3018_s16 = scalar_select %p296_p7, %s2880_s23, %s298_s30  }
  0x13   : > { %p410_p10 = pnand %p2269_p6, %p409_p9 }
  0x14   : > { %3465 = sst [smem:[#allocation11_spill]] %s3018_s16  ;;  %p466_p11 = scmp.lt.s32.totalorder (!%p410_p10), %s2884_s24, 1 }
  0x15   : > { %413 = sbr.rel (%p410_p10) target bundleno = 3593 (0xe09), region = 64  ;;  %s3466_s0 = sld [smem:[#allocation12_spill]] (!%p410_p10) }
  0x16   : > { %s3467_s1 = sld [smem:[#allocation13_spill]] (!%p410_p10)  ;;  %s2443_s25 = sshll.u32 (!%p410_p10), %s2884_s24, 8 }
  0x1a   : > { %s3022_s17 = scalar_select %p466_p11, %s2884_s24, 1  ;;  %vm512_vm0 = vcmask 261120   ;;  %v2736_v2 = vld [vmem:[%s3451_s7 + $0x8] sm:$0xff]   ;;  %v2894_v3 = vmov 0.0   ;;  %vm2895_vm1 = vmmov 0   ;;  %v2737_v6 = vld [vmem:[%s3451_s7] sm:$0xff]  }
  0x1b   : > { %2504 = vmatprep.subr.bf16.mxu0 %v2894_v3  ;;  %2508 = vmatprep.mubr.msk.bf16.mxu0 %vm2895_vm1, %v2894_v3  ;;  %v2738_v8 = vld [vmem:[%s3451_s7 + $0x28] sm:$0xff]   ;;  %v2739_v9 = vld [vmem:[%s3451_s7 + $0x20] sm:$0xff]   ;;  %v2746_v21 = vld [vmem:[%s3451_s7 + $0x18] sm:$0xff]   ;;  %vm565_vm2 = vcmask 60416   ;;  %vm1232_vm3 = vcmask 64512   ;;  %vm1279_vm4 = vcmask 130048  }
  0x1c   : > { %s2272_s18 = sshll.u32 %s3022_s17, 3  ;;  %s2426_s28 = sshll.u32 %s3022_s17, 4  ;;  %2505 = vmatpush3.bf16.msra.mxu0 %v2736_v2  ;;  %2512 = vmatprep.subr.bf16.mxu1 %v2894_v3  ;;  %v2740_v10 = vld [vmem:[%s3451_s7 + $0x48] sm:$0xff]   ;;  %v2741_v16 = vld [vmem:[%s3451_s7 + $0x40] sm:$0xff]   ;;  %v2747_v22 = vld [vmem:[%s3451_s7 + $0x10] sm:$0xff]   ;;  %vm1348_vm5 = vcmask 1043456  }
  0x1d   : > { %s472_s27 = scalar_lea.vmem %s3466_s0, %s2272_s18  ;;  %s477_s29 = scalar_lea.vmem %s3467_s1, %s2426_s28  ;;  %2506 = vmatprep.subr.bf16.mxu0 %v2894_v3  ;;  %2516 = vmatprep.mubr.msk.bf16.mxu1 %vm2895_vm1, %v2894_v3  ;;  %v2742_v17 = vld [vmem:[%s3451_s7 + $0x68] sm:$0xff]   ;;  %v2743_v18 = vld [vmem:[%s3451_s7 + $0x60] sm:$0xff]   ;;  %v2748_v23 = vld [vmem:[%s3451_s7 + $0x38] sm:$0xff]   ;;  %vm1292_vm6 = vcmask 125952  }
  0x1e   : > { %v3028_v0 = vld [vmem:[%s472_s27] sm:$0xff]  ;;  %v487_v5 = vld [vmem:[%s477_s29 + $0x8] sm:$0xff]  ;;  %2513 = vmatpush3.bf16.msra.mxu1 %v2746_v21  ;;  %v2749_v24 = vld [vmem:[%s3451_s7 + $0x30] sm:$0xff]   ;;  %s480_s30 = scalar_lea.vmem %s3446_s2, %s3022_s17  ;;  %s3231_s18 = sand.u32 1, %s2876_s22  }
  0x1f   : > { %v1111_v1 = vsel %vm512_vm0, %v3028_v0, 0.0  ;;  %v486_v4 = vld [vmem:[%s477_s29] sm:$0xff]  ;;  %v2744_v19 = vld [vmem:[%s3449_s5 + $0x8] sm:$0xff]   ;;  %2514 = vmatprep.subr.bf16.mxu1 %v2894_v3  ;;  %v2750_v25 = vld [vmem:[%s3451_s7 + $0x58] sm:$0xff]   ;;  %s2271_s19 = sshll.u32 %s3231_s18, 4  ;;  %s3365_s27 = scalar_lea.hbm %s3456_s12, %s2443_s25 }
  0x20   : > { %1112 = vadd.xlane.f32.xlu0 %v1111_v1  ;;  %v3049_v7 = vpack.c.bf16 %v487_v5, %v486_v4  ;;  %2507 = vmatpush3.bf16.msra.mxu0 %v2737_v6  ;;  %v2745_v20 = vld [vmem:[%s3449_s5] sm:$0xff]   ;;  %v2751_v26 = vld [vmem:[%s3451_s7 + $0x50] sm:$0xff]   ;;  %v2752_v27 = vld [vmem:[%s3451_s7 + $0x78] sm:$0xff]   ;;  %s3238_s29 = scalar_lea.vmem [#allocation5], %s2271_s19  ;;  %s2896_s17 = smov [#allocation5]  }
  0x21   : > { %2520 = vmatprep.subr.bf16.mxu0 %v2894_v3  ;;  %v2275_v28 = vld [vmem:[%s3452_s8] ss:$0 sm:$0xff]  ;;  %v2297_v36 = vld [vmem:[%s3452_s8 + $0x2] ss:$0 sm:$0xff]  ;;  %v2753_v41 = vld [vmem:[%s3451_s7 + $0x70] sm:$0xff]   ;;  %s2136_s19 = sshll.u32 %s3238_s29, 4  ;;  %s3360_s19 = int_to_ptr.vmem [resolvable:$true] %s2136_s19 }
  0x22   : > { %2515 = vmatpush3.bf16.msra.mxu1 %v2747_v22  ;;  %v2358_v53 = vld [vmem:[%s3447_s3] ss:$0 sm:$0xff]  ;;  %v2319_v59 = vld [vmem:[%s3452_s8 + $0x4] ss:$0 sm:$0xff]  ;;  %v2341_v5 = vld [vmem:[%s3452_s8 + $0x6] ss:$0 sm:$0xff] }
  0x23   : > { %2509 = vmatmul.mubr.msk.bf16.vlgmr.msra.gmra.mxu0 %vm512_vm0, %v3049_v7  ;;  %2528 = vmatprep.subr.bf16.mxu1 %v2894_v3  ;;  %v2359_v55 = vld [vmem:[%s3448_s4] ss:$0 sm:$0xff]  ;;  %s2790_s14 = sshll.u32 %s2896_s17, 4  ;;  %s2791_s14 = int_to_ptr.vmem [resolvable:$false] %s2790_s14 }
  0x24   : > { %2521 = vmatpush3.bf16.msra.mxu0 %v2738_v8  ;;  %2524 = vmatprep.mubr.msk.bf16.mxu0 %vm2895_vm1, %v2894_v3  ;;  %p2793_p1 = scmp.lt.s32.totalorder %s3360_s19, %s2791_s14 }
  0x25   : > { %2522 = vmatprep.subr.bf16.mxu0 %v2894_v3  ;;  %2517 = vmatmul.mubr.msk.bf16.vlgmr.msra.gmra.mxu1 %vm512_vm0, %v3049_v7 }
  0x26   : > { %2529 = vmatpush3.bf16.msra.mxu1 %v2748_v23  ;;  %2532 = vmatprep.mubr.msk.bf16.mxu1 %vm2895_vm1, %v2894_v3 }
  0x27   : > { %2530 = vmatprep.subr.bf16.mxu1 %v2894_v3 }
  0x28   : > { %2523 = vmatpush3.bf16.msra.mxu0 %v2739_v9 }
  0x29   : > { %2536 = vmatprep.subr.bf16.mxu0 %v2894_v3 }
  0x2a   : > { %2531 = vmatpush3.bf16.msra.mxu1 %v2749_v24  ;;  %v2308_v24 = vld [vmem:[%s3452_s8 + $0x3] ss:$0 sm:$0xff] }
  0x2b   : > { %2525 = vmatmul.mubr.msk.bf16.vlgmr.msra.gmra.mxu0 %vm512_vm0, %v3049_v7  ;;  %2544 = vmatprep.subr.bf16.mxu1 %v2894_v3 }
  0x2c   : > { %2537 = vmatpush3.bf16.msra.mxu0 %v2740_v10  ;;  %2540 = vmatprep.mubr.msk.bf16.mxu0 %vm2895_vm1, %v2894_v3 }
  0x2d   : > { %2538 = vmatprep.subr.bf16.mxu0 %v2894_v3  ;;  %2533 = vmatmul.mubr.msk.bf16.vlgmr.msra.gmra.mxu1 %vm512_vm0, %v3049_v7 }
  0x2e   : > { %2545 = vmatpush3.bf16.msra.mxu1 %v2750_v25  ;;  %2548 = vmatprep.mubr.msk.bf16.mxu1 %vm2895_vm1, %v2894_v3 }
  0x2f   : > { %2546 = vmatprep.subr.bf16.mxu1 %v2894_v3 }
  0x30   : > { %2539 = vmatpush3.bf16.msra.mxu0 %v2741_v16  ;;  %v2286_v16 = vld [vmem:[%s3452_s8 + $0x1] ss:$0 sm:$0xff] }
  0x31   : > { %2552 = vmatprep.subr.bf16.mxu0 %v2894_v3 }
  0x32   : > { %2547 = vmatpush3.bf16.msra.mxu1 %v2751_v26 }
  0x33   : > { %2541 = vmatmul.mubr.msk.bf16.vlgmr.msra.gmra.mxu0 %vm512_vm0, %v3049_v7  ;;  %2560 = vmatprep.subr.bf16.mxu1 %v2894_v3 }
  0x34   : > { %2553 = vmatpush3.bf16.msra.mxu0 %v2742_v17  ;;  %2556 = vmatprep.mubr.msk.bf16.mxu0 %vm2895_vm1, %v2894_v3 }
  0x35   : > { %2554 = vmatprep.subr.bf16.mxu0 %v2894_v3  ;;  %2549 = vmatmul.mubr.msk.bf16.vlgmr.msra.gmra.mxu1 %vm512_vm0, %v3049_v7 }
  0x36   : > { %2561 = vmatpush3.bf16.msra.mxu1 %v2752_v27  ;;  %2564 = vmatprep.mubr.msk.bf16.mxu1 %vm2895_vm1, %v2894_v3 }
  0x37   : > { %2562 = vmatprep.subr.bf16.mxu1 %v2894_v3 }
  0x38   : > { %2555 = vmatpush3.bf16.msra.mxu0 %v2743_v18 }
  0x39   : > { %2568 = vmatprep.subr.bf16.mxu0 %v2894_v3 }
  0x3a   : > { %2563 = vmatpush3.bf16.msra.mxu1 %v2753_v41 }
  0x3b   : > { %2557 = vmatmul.mubr.msk.bf16.vlgmr.msra.gmra.mxu0 %vm512_vm0, %v3049_v7  ;;  %2576 = vmatprep.subr.bf16.mxu1 %v2894_v3 }
  0x3c   : > { %2572 = vmatprep.mubr.msk.bf16.mxu0 %vm2895_vm1, %v2894_v3  ;;  %2569 = vmatpush3.bf16.msra.mxu0 %v2744_v19 }
  0x3d   : > { %2570 = vmatprep.subr.bf16.mxu0 %v2894_v3  ;;  %2565 = vmatmul.mubr.msk.bf16.vlgmr.msra.gmra.mxu1 %vm512_vm0, %v3049_v7 }
  0x3e   : > { %2578 = vmatprep.mubr.msk.bf16.mxu1 %vm2895_vm1, %v2894_v3 }
  0x40   : > { %2571 = vmatpush3.bf16.msra.mxu0 %v2745_v20 }
  0x41   : > { %2582 = vmatprep.subr.bf16.mxu0 %v2894_v3 }
  0xa9   : > { %v1113_v11 = vpop.xlane.xlu0 %1112 }
  0xaa   : > { %v1115_v12 = vmul.f32 0.03125, %v1113_v11 }
  0xac   : > { %v3073_v13 = vsub.f32 %v3028_v0, %v1115_v12 }
  0xae   : > { %v1117_v14 = vmul.f32 %v3073_v13, %v3073_v13 }
  0xb0   : > { %v1118_v15 = vsel %vm512_vm0, %v1117_v14, 0.0 }
  0xb1   : > { %1119 = vadd.xlane.f32.xlu0 %v1118_v15 }
  0xe3   : > { %v550_v29 = vpop.f32.mrf.mxu0 }
  0xe4   : > { %v551_v30 = vadd.f32 %v2275_v28, %v550_v29 }
  0xe5   : > { %v2510_v31 = vpop.f32.mrf.mxu0  ;;  %v627_v17 = vpop.f32.mrf.mxu1 }
  0xe6   : > { %v2427_v32 = vpack.c.bf16 %v551_v30, %v551_v30  ;;  %v628_v18 = vadd.f32 %v2286_v16, %v627_v17  ;;  %v2757_v17 = vld [vmem:[%s3449_s5 + $0x10] sm:$0xff]  }
  0xe7   : > { %v553_v33 = vpop.f32.mrf.mxu0  ;;  %v2518_v19 = vpop.f32.mrf.mxu1 }
  0xe8   : > { %566 = vst.msk [vmem:[#allocation2] sm:$0xf] %vm565_vm2, %v2427_v32  ;;  %v554_v34 = vadd.f32 %v2275_v28, %v553_v33  ;;  %v2429_v20 = vpack.c.bf16 %v628_v18, %v628_v18  ;;  %v2330_v33 = vld [vmem:[%s3452_s8 + $0x5] ss:$0 sm:$0xff] }
  0xe9   : > { %v2511_v35 = vpop.f32.mrf.mxu0  ;;  %v630_v21 = vpop.f32.mrf.mxu1 }
  0xea   : > { %v2428_v37 = vpack.c.bf16 %v554_v34, %v554_v34  ;;  %643 = vst.msk [vmem:[#allocation2 + $0x8] sm:$0xf] %vm565_vm2, %v2429_v20  ;;  %v631_v22 = vadd.f32 %v2286_v16, %v630_v21 }
  0xeb   : > { %v704_v38 = vpop.f32.mrf.mxu0  ;;  %v2519_v23 = vpop.f32.mrf.mxu1 }
  0xec   : > { %567 = vst.msk [vmem:[#allocation2 + $0x4] sm:$0xf] %vm565_vm2, %v2428_v37  ;;  %v705_v39 = vadd.f32 %v2297_v36, %v704_v38  ;;  %v2430_v25 = vpack.c.bf16 %v631_v22, %v631_v22 }
  0xed   : > { %v2526_v40 = vpop.f32.mrf.mxu0  ;;  %v781_v26 = vpop.f32.mrf.mxu1 }
  0xee   : > { %v2431_v42 = vpack.c.bf16 %v705_v39, %v705_v39  ;;  %644 = vst.msk [vmem:[#allocation2 + $0xc] sm:$0xf] %vm565_vm2, %v2430_v25  ;;  %v782_v27 = vadd.f32 %v2308_v24, %v781_v26  ;;  %v2376_v26 = vld [vmem:[%s3450_s6 + $0x1] ss:$0 sm:$0xff] }
  0xef   : > { %v707_v43 = vpop.f32.mrf.mxu0  ;;  %v2534_v28 = vpop.f32.mrf.mxu1 }
  0xf0   : > { %720 = vst.msk [vmem:[#allocation2 + $0x10] sm:$0xf] %vm565_vm2, %v2431_v42  ;;  %v708_v44 = vadd.f32 %v2297_v36, %v707_v43  ;;  %v2433_v29 = vpack.c.bf16 %v782_v27, %v782_v27  ;;  %v2352_v43 = vld [vmem:[%s3452_s8 + $0x7] ss:$0 sm:$0xff] }
  0xf1   : > { %v2527_v45 = vpop.f32.mrf.mxu0  ;;  %v784_v30 = vpop.f32.mrf.mxu1 }
  0xf2   : > { %v2432_v46 = vpack.c.bf16 %v708_v44, %v708_v44  ;;  %797 = vst.msk [vmem:[#allocation2 + $0x18] sm:$0xf] %vm565_vm2, %v2433_v29  ;;  %v785_v31 = vadd.f32 %v2308_v24, %v784_v30 }
  0xf3   : > { %v2754_v47 = vld [vmem:[#allocation2] sm:$0xff]   ;;  %v858_v60 = vpop.f32.mrf.mxu0  ;;  %v2535_v32 = vpop.f32.mrf.mxu1 }
  0xf4   : > { %721 = vst.msk [vmem:[#allocation2 + $0x14] sm:$0xf] %vm565_vm2, %v2432_v46  ;;  %v1237_v48 = vsel %vm1232_vm3, %v2754_v47, 0  ;;  %v859_v61 = vadd.f32 %v2319_v59, %v858_v60  ;;  %v2434_v34 = vpack.c.bf16 %v785_v31, %v785_v31  ;;  %v3220_v60 = vld [vmem:[%s480_s30] ss:$0 sm:$0xff]  ;;  %s2786_s30 = scalar_lea.vmem %s3360_s19, 256 }
  0xf5   : > { %2577 = vmatpush3.bf16.xpose.msra.mxu1 %v1237_v48  ;;  %v2542_v62 = vpop.f32.mrf.mxu0  ;;  %v935_v35 = vpop.f32.mrf.mxu1  ;;  %v2759_v19 = vld [vmem:[#allocation2 + $0x8] sm:$0xff]   ;;  %p2787_p12 = scmp.ne.s32.totalorder %s3360_s19, %s2786_s30 }
  0xf6   : > { %2588 = vmatprep.subr.bf16.mxu1 %v2894_v3  ;;  %v2435_v63 = vpack.c.bf16 %v859_v61, %v859_v61  ;;  %798 = vst.msk [vmem:[#allocation2 + $0x1c] sm:$0xf] %vm565_vm2, %v2434_v34  ;;  %v936_v36 = vadd.f32 %v2330_v33, %v935_v35  ;;  %v1474_v23 = vsel %vm1232_vm3, %v2759_v19, 0 }
  0xf7   : > { %v861_v1 = vpop.f32.mrf.mxu0  ;;  %v2550_v37 = vpop.f32.mrf.mxu1  ;;  %p2788_p13 = pnand %p2787_p12, %p3005_p4 }
  0xf8   : > { %874 = vst.msk [vmem:[#allocation2 + $0x20] sm:$0xf] %vm565_vm2, %v2435_v63  ;;  %v862_v2 = vadd.f32 %v2319_v59, %v861_v1  ;;  %v2437_v38 = vpack.c.bf16 %v936_v36, %v936_v36 }
  0xf9   : > { %v2543_v4 = vpop.f32.mrf.mxu0  ;;  %v938_v39 = vpop.f32.mrf.mxu1  ;;  %p2789_p0 = pneg %p2788_p13 }
  0xfa   : > { %v2436_v6 = vpack.c.bf16 %v862_v2, %v862_v2  ;;  %951 = vst.msk [vmem:[#allocation2 + $0x28] sm:$0xf] %vm565_vm2, %v2437_v38  ;;  %v939_v40 = vadd.f32 %v2330_v33, %v938_v39 }
  0xfb   : > { %v1012_v7 = vpop.f32.mrf.mxu0  ;;  %v2551_v41 = vpop.f32.mrf.mxu1 }
  0xfc   : > { %875 = vst.msk [vmem:[#allocation2 + $0x24] sm:$0xf] %vm565_vm2, %v2436_v6  ;;  %v1013_v8 = vadd.f32 %v2341_v5, %v1012_v7  ;;  %v2438_v42 = vpack.c.bf16 %v939_v40, %v939_v40 }
  0xfd   : > { %v2558_v9 = vpop.f32.mrf.mxu0  ;;  %v1089_v44 = vpop.f32.mrf.mxu1 }
  0xfe   : > { %v2439_v10 = vpack.c.bf16 %v1013_v8, %v1013_v8  ;;  %952 = vst.msk [vmem:[#allocation2 + $0x2c] sm:$0xf] %vm565_vm2, %v2438_v42  ;;  %v1090_v45 = vadd.f32 %v2352_v43, %v1089_v44 }
  0xff   : > { %v1015_v11 = vpop.f32.mrf.mxu0  ;;  %v2566_v46 = vpop.f32.mrf.mxu1 }
 0x100   : > { %1028 = vst.msk [vmem:[#allocation2 + $0x30] sm:$0xf] %vm565_vm2, %v2439_v10  ;;  %v1016_v12 = vadd.f32 %v2341_v5, %v1015_v11  ;;  %v2441_v47 = vpack.c.bf16 %v1090_v45, %v1090_v45  ;;  %v1344_v10 = vld [vmem:[%s3453_s9] sm:$0xf] }
 0x101   : > { %v1092_v48 = vpop.f32.mrf.mxu1  ;;  %v1350_v11 = vsel %vm1348_vm5, %v1344_v10, 0 }
 0x102   : > { %v2440_v14 = vpack.c.bf16 %v1016_v12, %v1016_v12  ;;  %1105 = vst.msk [vmem:[#allocation2 + $0x38] sm:$0xf] %vm565_vm2, %v2441_v47 }
 0x103   : > { %v2755_v15 = vld [vmem:[#allocation2 + $0x20] sm:$0xff]  }
 0x104   : > { %1029 = vst.msk [vmem:[#allocation2 + $0x34] sm:$0xf] %vm565_vm2, %v2440_v14 }
 0x105   : > { %v2758_v18 = vld [vmem:[#allocation2 + $0x28] sm:$0xff]  }
 0x13a   : > { %v1120_v49 = vpop.xlane.xlu0 %1119 }
 0x13b   : > { %v1121_v50 = vmul.f32 0.03125, %v1120_v49  ;;  %v1093_v49 = vadd.f32 %v2352_v43, %v1092_v48  ;;  %v2385_v48 = vld [vmem:[%s3453_s9 + $0x4] sm:$0xf] }
 0x13d   : > { %v1122_v51 = vadd.f32 1e-05, %v1121_v50  ;;  %v2567_v50 = vpop.f32.mrf.mxu1 }
 0x13f   : > { %2768 = vrsqrt.f32 %v1122_v51  ;;  %v2442_v51 = vpack.c.bf16 %v1093_v49, %v1093_v49  ;;  %v1586_v49 = vsel %vm1348_vm5, %v2385_v48, 0 }
 0x141   : > { %1106 = vst.msk [vmem:[#allocation2 + $0x3c] sm:$0xf] %vm565_vm2, %v2442_v51 }
 0x14c   : > { %v2769_v52 = vpop.eup %2768 }
 0x14d   : > { %v1124_v54 = vmul.f32 %v2769_v52, %v3073_v13  ;;  %v2559_v13 = vpop.f32.mrf.mxu0  ;;  %v2361_v52 = vld [vmem:[%s3450_s6] ss:$0 sm:$0xff] }
 0x14f   : > { %v1131_v56 = vmul.f32 %v2358_v53, %v1124_v54 }
 0x151   : > { %v1138_v57 = vadd.f32 %v2359_v55, %v1131_v56 }
 0x153   : > { %v3173_v58 = vpack.c.bf16 %v1138_v57, %v1138_v57 }
 0x155   : > { %2573 = vmatmul.mubr.msk.bf16.vlgmr.msra.gmra.mxu0 %vm512_vm0, %v3173_v58 }
 0x156   : > { %2584 = vmatprep.mubr.msk.bf16.mxu0 %vm2895_vm1, %v2894_v3  ;;  %2583 = vmatpush3.bf16.msra.mxu0 %v2755_v15  ;;  %v2756_v15 = vld [vmem:[%s3449_s5 + $0x18] sm:$0xff]  }
 0x157   : > { %2594 = vmatprep.subr.bf16.mxu0 %v2894_v3 }
 0x215   : > { %v1209_v53 = vpop.f32.mrf.mxu0 }
 0x216   : > { %v1210_v54 = vadd.f32 %v2361_v52, %v1209_v53  ;;  %v2760_v53 = vld [vmem:[%s3449_s5 + $0x28] sm:$0xff]  }
 0x217   : > { %v2574_v55 = vpop.f32.mrf.mxu0 }
 0x218   : > { %v1215_v56 = vpack.c.bf16 %v1210_v54, %v1210_v54  ;;  %v2761_v55 = vld [vmem:[%s3449_s5 + $0x20] sm:$0xff]  }
 0x219   : > { %v1212_v57 = vpop.f32.mrf.mxu0 }
 0x21a   : > { %2579 = vmatmul.mubr.msk.bf16.vlgmr.msra.gmra.mxu1 %vm1232_vm3, %v1215_v56  ;;  %v2762_v56 = vld [vmem:[#allocation2 + $0x30] sm:$0xff]  }
 0x21b   : > { %v2575_v59 = vpop.f32.mrf.mxu0  ;;  %2590 = vmatprep.mubr.msk.bf16.mxu1 %vm2895_vm1, %v2894_v3  ;;  %2589 = vmatpush3.bf16.msra.mxu1 %v1350_v11  ;;  %v2763_v57 = vld [vmem:[#allocation2 + $0x10] sm:$0xff]   ;;  %v2360_v11 = vld [vmem:[%s3454_s10] ss:$0 sm:$0xff] }
 0x21c   : > { %2602 = vmatprep.subr.bf16.mxu1 %v2894_v3 }
 0x2da   : > { %v1273_v61 = vpop.f32.mrf.mxu1 }
 0x2db   : > { %v1274_v62 = vadd.f32 %v3220_v60, %v1273_v61 }
 0x2dc   : > { %v2580_v63 = vpop.f32.mrf.mxu1 }
 0x2dd   : > { %v1280_v1 = vsel %vm1279_vm4, %v1274_v62, -inf  ;;  %v1710_v63 = vsel %vm1232_vm3, %v2763_v57, 0 }
 0x2de   : > { %1281 = vmax.xlane.f32.xlu1 %v1280_v1  ;;  %v1276_v2 = vpop.f32.mrf.mxu1 }
 0x2e0   : > { %v2581_v4 = vpop.f32.mrf.mxu1 }
 0x2e1   : > { %v2392_v4 = vld [vmem:[%s3450_s6 + $0x2] ss:$0 sm:$0xff] }
 0x367   : > { %v1282_v5 = vpop.xlane.xlu1 %1281 }
 0x368   : > { %v1283_v6 = vsub.f32 %v1274_v62, %v1282_v5 }
 0x36a   : > { %v1284_v7 = vmul.f32 1.442695, %v1283_v6 }
 0x36c   : > { %2770 = vpow2.f32 %v1284_v7 }
 0x379   : > { %v2771_v8 = vpop.eup %2770 }
 0x37a   : > { %v1286_v9 = vsel %vm1279_vm4, %v2771_v8, 0.0 }
 0x37b   : > { %1287 = vadd.xlane.f32.xlu1 %v1286_v9 }
 0x404   : > { %v1288_v12 = vpop.xlane.xlu1 %1287 }
 0x405   : > { %2772 = vrcp.f32 %v1288_v12  ;;  %v1148_v12 = vadd.f32 %v2360_v11, %v3028_v0 }
 0x412   : > { %v2773_v13 = vpop.eup %2772 }
 0x413   : > { %v1290_v14 = vmul.f32 %v2773_v13, %v2771_v8 }
 0x415   : > { %v1291_v16 = vpack.c.bf16 %v1290_v14, %v1290_v14 }
 0x417   : > { %2585 = vmatmul.mubr.msk.bf16.vlgmr.msra.gmra.mxu0 %vm1279_vm4, %v1291_v16  ;;  %1293 = vst.msk [vmem:[%s3238_s29] sm:$0xf] %vm1292_vm6, %v1291_v16 }
 0x418   : > { %2595 = vmatpush3.bf16.msra.mxu0 %v2756_v15  ;;  %2598 = vmatprep.mubr.msk.bf16.mxu0 %vm2895_vm1, %v2894_v3 }
 0x419   : > { %2596 = vmatprep.subr.bf16.mxu0 %v2894_v3 }
 0x41c   : > { %2597 = vmatpush3.bf16.msra.mxu0 %v2757_v17 }
 0x41d   : > { %2608 = vmatprep.subr.bf16.mxu0 %v2894_v3 }
 0x41f   : > { %2599 = vmatmul.mubr.msk.bf16.vlgmr.msra.gmra.mxu0 %vm512_vm0, %v3173_v58 }
 0x420   : > { %2609 = vmatpush3.bf16.msra.mxu0 %v2758_v18  ;;  %2610 = vmatprep.mubr.msk.bf16.mxu0 %vm2895_vm1, %v2894_v3 }
 0x421   : > { %2620 = vmatprep.subr.bf16.mxu0 %v2894_v3 }
 0x4d7   : > { %v1337_v20 = vpop.f32.mrf.mxu0 }
 0x4d8   : > { %v1343_v21 = vpack.c.bf16 %v1337_v20, %v1337_v20 }
 0x4d9   : > { %v2586_v22 = vpop.f32.mrf.mxu0 }
 0x4da   : > { %2591 = vmatmul.mubr.msk.bf16.vlgmr.msra.gmra.mxu1 %vm1232_vm3, %v1343_v21 }
 0x4db   : > { %2603 = vmatpush3.bf16.xpose.msra.mxu1 %v1474_v23  ;;  %v1340_v24 = vpop.f32.mrf.mxu0  ;;  %2604 = vmatprep.mubr.msk.bf16.mxu1 %vm2895_vm1, %v2894_v3 }
 0x4dc   : > { %2614 = vmatprep.subr.bf16.mxu1 %v2894_v3 }
 0x4dd   : > { %v2587_v25 = vpop.f32.mrf.mxu0 }
 0x4df   : > { %v1452_v27 = vpop.f32.mrf.mxu0 }
 0x4e0   : > { %v1453_v28 = vadd.f32 %v2376_v26, %v1452_v27 }
 0x4e1   : > { %v2600_v29 = vpop.f32.mrf.mxu0 }
 0x4e2   : > { %v1458_v30 = vpack.c.bf16 %v1453_v28, %v1453_v28  ;;  %v2401_v29 = vld [vmem:[%s3453_s9 + $0x8] sm:$0xf] }
 0x4e3   : > { %v1455_v31 = vpop.f32.mrf.mxu0 }
 0x4e4   : > { %2605 = vmatmul.mubr.msk.bf16.vlgmr.msra.gmra.mxu1 %vm1232_vm3, %v1458_v30  ;;  %v1822_v30 = vsel %vm1348_vm5, %v2401_v29, 0 }
 0x4e5   : > { %v2601_v32 = vpop.f32.mrf.mxu0  ;;  %2616 = vmatprep.mubr.msk.bf16.mxu1 %vm2895_vm1, %v2894_v3  ;;  %2615 = vmatpush3.bf16.msra.mxu1 %v1586_v49 }
 0x4e6   : > { %2628 = vmatprep.subr.bf16.mxu1 %v2894_v3 }
 0x59a   : > { %v3265_v33 = vpop.f32.mrf.mxu1 }
 0x59b   : > { %v1392_v13 = vadd.f32 %v3265_v33, %v1148_v12 }
 0x59c   : > { %v2592_v34 = vpop.f32.mrf.mxu1 }
 0x59d   : > { %v2764_v34 = vld [vmem:[%s3449_s5 + $0x38] sm:$0xff]  }
 0x59e   : > { %v1389_v35 = vpop.f32.mrf.mxu1 }
 0x5a0   : > { %v2593_v36 = vpop.f32.mrf.mxu1 }
 0x5a1   : > { %v2765_v36 = vld [vmem:[%s3449_s5 + $0x30] sm:$0xff]  }
 0x5a4   : > { %v1510_v37 = vpop.f32.mrf.mxu1 }
 0x5a5   : > { %v1511_v38 = vadd.f32 %v3220_v60, %v1510_v37  ;;  %v2766_v37 = vld [vmem:[#allocation2 + $0x38] sm:$0xff]  }
 0x5a6   : > { %v2606_v39 = vpop.f32.mrf.mxu1 }
 0x5a7   : > { %v1516_v40 = vsel %vm1279_vm4, %v1511_v38, -inf }
 0x5a8   : > { %1517 = vmax.xlane.f32.xlu0 %v1516_v40  ;;  %v1513_v41 = vpop.f32.mrf.mxu1 }
 0x5aa   : > { %v2607_v42 = vpop.f32.mrf.mxu1 }
 0x631   : > { %v1518_v43 = vpop.xlane.xlu0 %1517 }
 0x632   : > { %v1519_v44 = vsub.f32 %v1511_v38, %v1518_v43  ;;  %v2767_v38 = vld [vmem:[#allocation2 + $0x18] sm:$0xff]  }
 0x633   : > { %v1946_v42 = vsel %vm1232_vm3, %v2767_v38, 0 }
 0x634   : > { %v1520_v45 = vmul.f32 1.442695, %v1519_v44  ;;  %v2408_v44 = vld [vmem:[%s3450_s6 + $0x3] ss:$0 sm:$0xff] }
 0x636   : > { %2774 = vpow2.f32 %v1520_v45 }
 0x643   : > { %v2775_v46 = vpop.eup %2774 }
 0x644   : > { %v1522_v47 = vsel %vm1279_vm4, %v2775_v46, 0.0 }
 0x645   : > { %1523 = vadd.xlane.f32.xlu1 %v1522_v47 }
 0x6ce   : > { %v1524_v50 = vpop.xlane.xlu1 %1523 }
 0x6cf   : > { %2776 = vrcp.f32 %v1524_v50 }
 0x6dc   : > { %v2777_v51 = vpop.eup %2776 }
 0x6dd   : > { %v1526_v52 = vmul.f32 %v2777_v51, %v2775_v46 }
 0x6df   : > { %v1527_v54 = vpack.c.bf16 %v1526_v52, %v1526_v52 }
 0x6e1   : > { %2611 = vmatmul.mubr.msk.bf16.vlgmr.msra.gmra.mxu0 %vm1279_vm4, %v1527_v54  ;;  %2382 = vst.msk [vmem:[%s3238_s29 + $0x4] sm:$0xf] %vm1292_vm6, %v1527_v54 }
 0x6e2   : > { %2621 = vmatpush3.bf16.msra.mxu0 %v2760_v53  ;;  %2624 = vmatprep.mubr.msk.bf16.mxu0 %vm2895_vm1, %v2894_v3 }
 0x6e3   : > { %2622 = vmatprep.subr.bf16.mxu0 %v2894_v3 }
 0x6e6   : > { %2623 = vmatpush3.bf16.msra.mxu0 %v2761_v55 }
 0x6e7   : > { %2634 = vmatprep.subr.bf16.mxu0 %v2894_v3 }
 0x6e9   : > { %2625 = vmatmul.mubr.msk.bf16.vlgmr.msra.gmra.mxu0 %vm512_vm0, %v3173_v58 }
 0x6ea   : > { %2635 = vmatpush3.bf16.msra.mxu0 %v2762_v56  ;;  %2636 = vmatprep.mubr.msk.bf16.mxu0 %vm2895_vm1, %v2894_v3 }
 0x6eb   : > { %2646 = vmatprep.subr.bf16.mxu0 %v2894_v3 }
 0x7a1   : > { %v1573_v59 = vpop.f32.mrf.mxu0 }
 0x7a2   : > { %v1579_v61 = vpack.c.bf16 %v1573_v59, %v1573_v59 }
 0x7a3   : > { %v2612_v62 = vpop.f32.mrf.mxu0 }
 0x7a4   : > { %2617 = vmatmul.mubr.msk.bf16.vlgmr.msra.gmra.mxu1 %vm1232_vm3, %v1579_v61 }
 0x7a5   : > { %2629 = vmatpush3.bf16.xpose.msra.mxu1 %v1710_v63  ;;  %v1576_v1 = vpop.f32.mrf.mxu0  ;;  %2630 = vmatprep.mubr.msk.bf16.mxu1 %vm2895_vm1, %v2894_v3 }
 0x7a6   : > { %2640 = vmatprep.subr.bf16.mxu1 %v2894_v3 }
 0x7a7   : > { %v2613_v2 = vpop.f32.mrf.mxu0 }
 0x7a9   : > { %v1688_v5 = vpop.f32.mrf.mxu0 }
 0x7aa   : > { %v1689_v6 = vadd.f32 %v2392_v4, %v1688_v5 }
 0x7ab   : > { %v2626_v7 = vpop.f32.mrf.mxu0 }
 0x7ac   : > { %v1694_v8 = vpack.c.bf16 %v1689_v6, %v1689_v6  ;;  %v2417_v6 = vld [vmem:[%s3453_s9 + $0xc] sm:$0xf] }
 0x7ad   : > { %v1691_v9 = vpop.f32.mrf.mxu0 }
 0x7ae   : > { %2631 = vmatmul.mubr.msk.bf16.vlgmr.msra.gmra.mxu1 %vm1232_vm3, %v1694_v8 }
 0x7af   : > { %v2627_v10 = vpop.f32.mrf.mxu0  ;;  %2642 = vmatprep.mubr.msk.bf16.mxu1 %vm2895_vm1, %v2894_v3  ;;  %2641 = vmatpush3.bf16.msra.mxu1 %v1822_v30 }
 0x7b0   : > { %2654 = vmatprep.subr.bf16.mxu1 %v2894_v3 }
 0x864   : > { %v1622_v14 = vpop.f32.mrf.mxu1 }
 0x865   : > { %v1628_v15 = vadd.f32 %v1622_v14, %v1392_v13 }
 0x866   : > { %v2618_v16 = vpop.f32.mrf.mxu1 }
 0x868   : > { %v1625_v17 = vpop.f32.mrf.mxu1 }
 0x86a   : > { %v2619_v18 = vpop.f32.mrf.mxu1 }
 0x86e   : > { %v1746_v19 = vpop.f32.mrf.mxu1 }
 0x86f   : > { %v1747_v20 = vadd.f32 %v3220_v60, %v1746_v19 }
 0x870   : > { %v2632_v21 = vpop.f32.mrf.mxu1 }
 0x871   : > { %v1752_v22 = vsel %vm1279_vm4, %v1747_v20, -inf }
 0x872   : > { %1753 = vmax.xlane.f32.xlu0 %v1752_v22  ;;  %v1749_v23 = vpop.f32.mrf.mxu1 }
 0x874   : > { %v2633_v24 = vpop.f32.mrf.mxu1 }
 0x8fb   : > { %v1754_v25 = vpop.xlane.xlu0 %1753 }
 0x8fc   : > { %v1755_v26 = vsub.f32 %v1747_v20, %v1754_v25 }
 0x8fe   : > { %v1756_v27 = vmul.f32 1.442695, %v1755_v26 }
 0x900   : > { %2778 = vpow2.f32 %v1756_v27 }
 0x90d   : > { %v2779_v0 = vpop.eup %2778 }
 0x90e   : > { %v1758_v28 = vsel %vm1279_vm4, %v2779_v0, 0.0 }
 0x90f   : > { %1759 = vadd.xlane.f32.xlu1 %v1758_v28 }
 0x998   : > { %v1760_v31 = vpop.xlane.xlu1 %1759 }
 0x999   : > { %2780 = vrcp.f32 %v1760_v31 }
 0x9a6   : > { %v2781_v32 = vpop.eup %2780 }
 0x9a7   : > { %v1762_v33 = vmul.f32 %v2781_v32, %v2779_v0 }
 0x9a9   : > { %v1763_v35 = vpack.c.bf16 %v1762_v33, %v1762_v33 }
 0x9ab   : > { %2637 = vmatmul.mubr.msk.bf16.vlgmr.msra.gmra.mxu0 %vm1279_vm4, %v1763_v35  ;;  %2398 = vst.msk [vmem:[%s3238_s29 + $0x8] sm:$0xf] %vm1292_vm6, %v1763_v35 }
 0x9ac   : > { %2647 = vmatpush3.bf16.msra.mxu0 %v2764_v34  ;;  %2650 = vmatprep.mubr.msk.bf16.mxu0 %vm2895_vm1, %v2894_v3 }
 0x9ad   : > { %2648 = vmatprep.subr.bf16.mxu0 %v2894_v3 }
 0x9b0   : > { %2649 = vmatpush3.bf16.msra.mxu0 %v2765_v36 }
 0x9b1   : > { %2660 = vmatprep.subr.bf16.mxu0 %v2894_v3 }
 0x9b3   : > { %2651 = vmatmul.mubr.msk.bf16.vlgmr.msra.gmra.mxu0 %vm512_vm0, %v3173_v58 }
 0x9b4   : > { %2661 = vmatpush3.bf16.msra.mxu0 %v2766_v37  ;;  %2662 = vmatprep.mubr.msk.bf16.mxu0 %vm2895_vm1, %v2894_v3 }
 0xa6b   : > { %v1809_v39 = vpop.f32.mrf.mxu0 }
 0xa6c   : > { %v1815_v40 = vpack.c.bf16 %v1809_v39, %v1809_v39 }
 0xa6d   : > { %v2638_v41 = vpop.f32.mrf.mxu0 }
 0xa6e   : > { %2643 = vmatmul.mubr.msk.bf16.vlgmr.msra.gmra.mxu1 %vm1232_vm3, %v1815_v40 }
 0xa6f   : > { %2655 = vmatpush3.bf16.xpose.msra.mxu1 %v1946_v42  ;;  %v1812_v43 = vpop.f32.mrf.mxu0  ;;  %2656 = vmatprep.mubr.msk.bf16.mxu1 %vm2895_vm1, %v2894_v3 }
 0xa70   : > { %2666 = vmatprep.subr.bf16.mxu1 %v2894_v3 }
 0xa71   : > { %v2639_v58 = vpop.f32.mrf.mxu0 }
 0xa73   : > { %v1924_v45 = vpop.f32.mrf.mxu0 }
 0xa74   : > { %v1925_v46 = vadd.f32 %v2408_v44, %v1924_v45 }
 0xa75   : > { %v2652_v47 = vpop.f32.mrf.mxu0 }
 0xa76   : > { %v1930_v48 = vpack.c.bf16 %v1925_v46, %v1925_v46 }
 0xa77   : > { %v1927_v49 = vpop.f32.mrf.mxu0 }
 0xa78   : > { %2657 = vmatmul.mubr.msk.bf16.vlgmr.msra.gmra.mxu1 %vm1232_vm3, %v1930_v48 }
 0xa79   : > { %v2653_v50 = vpop.f32.mrf.mxu0  ;;  %2668 = vmatprep.mubr.msk.bf16.mxu1 %vm2895_vm1, %v2894_v3 }
 0xb2e   : > { %v1858_v51 = vpop.f32.mrf.mxu1 }
 0xb2f   : > { %v3345_v52 = vadd.f32 %v1858_v51, %v1628_v15 }
 0xb30   : > { %v2644_v53 = vpop.f32.mrf.mxu1 }
 0xb32   : > { %v1861_v54 = vpop.f32.mrf.mxu1 }
 0xb34   : > { %v2645_v55 = vpop.f32.mrf.mxu1 }
 0xb38   : > { %v1982_v56 = vpop.f32.mrf.mxu1 }
 0xb39   : > { %v1983_v57 = vadd.f32 %v3220_v60, %v1982_v56  ;;  %v2058_v60 = vsel %vm1348_vm5, %v2417_v6, 0 }
 0xb3a   : > { %v2658_v59 = vpop.f32.mrf.mxu1  ;;  %2667 = vmatpush3.bf16.msra.mxu1 %v2058_v60 }
 0xb3b   : > { %v1988_v61 = vsel %vm1279_vm4, %v1983_v57, -inf }
 0xb3c   : > { %1989 = vmax.xlane.f32.xlu0 %v1988_v61  ;;  %v1985_v62 = vpop.f32.mrf.mxu1 }
 0xb3e   : > { %v2659_v63 = vpop.f32.mrf.mxu1 }
 0xbc5   : > { %v1990_v1 = vpop.xlane.xlu0 %1989 }
 0xbc6   : > { %v1991_v2 = vsub.f32 %v1983_v57, %v1990_v1 }
 0xbc8   : > { %v1992_v4 = vmul.f32 1.442695, %v1991_v2 }
 0xbca   : > { %2782 = vpow2.f32 %v1992_v4 }
 0xbd7   : > { %v2783_v3 = vpop.eup %2782 }
 0xbd8   : > { %v1994_v5 = vsel %vm1279_vm4, %v2783_v3, 0.0 }
 0xbd9   : > { %1995 = vadd.xlane.f32.xlu1 %v1994_v5 }
 0xc62   : > { %v1996_v7 = vpop.xlane.xlu1 %1995 }
 0xc63   : > { %2784 = vrcp.f32 %v1996_v7 }
 0xc70   : > { %v2785_v8 = vpop.eup %2784 }
 0xc71   : > { %v1998_v9 = vmul.f32 %v2785_v8, %v2783_v3 }
 0xc73   : > { %v1999_v10 = vpack.c.bf16 %v1998_v9, %v1998_v9 }
 0xc75   : > { %2663 = vmatmul.mubr.msk.bf16.vlgmr.msra.gmra.mxu0 %vm1279_vm4, %v1999_v10  ;;  %2414 = vst.msk [vmem:[%s3238_s29 + $0xc] sm:$0xf] %vm1292_vm6, %v1999_v10  ;;  %s2792_s29 = scalar_lea.vmem %s2791_s14, 512 }
 0xc76   : > { %p2794_p2 = scmp.lt.s32.totalorder %s2792_s29, %s2786_s30 }
 0xc78   : > { %p2795_p3 = por %p2794_p2, %p2793_p1 }
 0xc7a   : > { %p2796_p5 = pnand %p2795_p3, %p2789_p0 }
 0xd35   : > { %v2045_v11 = vpop.f32.mrf.mxu0 }
 0xd36   : > { %v2051_v12 = vpack.c.bf16 %v2045_v11, %v2045_v11 }
 0xd37   : > { %v2664_v13 = vpop.f32.mrf.mxu0 }
 0xd38   : > { %2669 = vmatmul.mubr.msk.bf16.vlgmr.msra.gmra.mxu1 %vm1232_vm3, %v2051_v12 }
 0xd39   : > { %v2048_v14 = vpop.f32.mrf.mxu0 }
 0xd3b   : > { %v2665_v15 = vpop.f32.mrf.mxu0 }
 0xd3c   : > { %2799 = shalt.err (!%p2796_p5)
}
 0xd3d   : > { %s2800_s25 = scalar_lea.hbm %s3365_s27, 256  ;;  %s2804_s17 = scalar_lea.hbm %s3456_s12, 512 }
 0xd3e   : > { %p2801_p6 = scmp.ne.s32.totalorder %s3365_s27, %s2800_s25  ;;  %p2805_p10 = scmp.lt.s32.totalorder %s3365_s27, %s3456_s12 }
 0xd3f   : > { %p2806_p11 = scmp.lt.s32.totalorder %s2804_s17, %s2800_s25 }
 0xd40   : > { %p2802_p7 = pnand %p2801_p6, %p3005_p4 }
 0xd41   : > { %p2807_p12 = por %p2806_p11, %p2805_p10 }
 0xd42   : > { %p2803_p9 = pneg %p2802_p7 }
 0xd44   : > { %p2808_p13 = pnand %p2807_p12, %p2803_p9 }
 0xd46   : > { %2811 = shalt.err (!%p2808_p13)
}
 0xd47   : > { %s2897_s30 = smov 64   ;;  %s2898_s14 = smov 4  }
 0xd48   : > { %s3468_s29 = scalar_lea.sflag [#allocation6], %s3231_s18  ;;  %s2270_s16 = sshll.u32 %s3231_s18, 3 }
 0xd49   : > { %2673 = dma.vmem_to_hbm [thread:$0]  (%p3005_p4), %s3360_s19, 256, %s3365_s27, %s3468_s29, %s2897_s30, %s2897_s30, %s2898_s14  }
 0xd4a   : > { %s2421_s0 = sshll.u32 %s2884_s24, 7  ;;  %s458_s28 = scalar_lea.vmem [#allocation3], %s2270_s16 }
 0xd4b   : > { %s2122_s25 = sshll.u32 %s458_s28, 4  ;;  %s3396_s1 = scalar_lea.hbm %s3455_s11, %s2421_s0  ;;  %s3398_s25 = int_to_ptr.vmem [resolvable:$true] %s2122_s25 }
 0xd4c   : > { %s2103_s24 = scalar_lea.sflag [#allocation4], %s3231_s18  ;;  %s2812_s19 = scalar_lea.vmem %s3398_s25, 128 }
 0xd4d   : > { %p2813_p0 = scmp.ne.s32.totalorder %s3398_s25, %s2812_s19  ;;  %s2899_s27 = smov [#allocation3]  }
 0xd4e   : > { %s2816_s30 = sshll.u32 %s2899_s27, 4  ;;  %s2817_s30 = int_to_ptr.vmem [resolvable:$false] %s2816_s30 }
 0xd4f   : > { %p2814_p1 = pnand %p2813_p0, %p3005_p4  ;;  %s2818_s14 = scalar_lea.vmem %s2817_s30, 256 }
 0xd50   : > { %p2819_p3 = scmp.lt.s32.totalorder %s3398_s25, %s2817_s30  ;;  %p2820_p5 = scmp.lt.s32.totalorder %s2818_s14, %s2812_s19 }
 0xd51   : > { %p2815_p2 = pneg %p2814_p1 }
 0xd52   : > { %p2821_p6 = por %p2820_p5, %p2819_p3 }
 0xd54   : > { %p2822_p7 = pnand %p2821_p6, %p2815_p2 }
 0xdf8   : > { %v2094_v16 = vpop.f32.mrf.mxu1 }
 0xdf9   : > { %v2100_v17 = vadd.f32 %v2094_v16, %v3345_v52 }
 0xdfa   : > { %v2670_v18 = vpop.f32.mrf.mxu1 }
 0xdfb   : > { %2101 = vst.msk [vmem:[%s458_s28] sm:$0xff] %vm512_vm0, %v2100_v17 }
 0xdfc   : > { %v2097_v19 = vpop.f32.mrf.mxu1 }
 0xdfd   : > { %2825 = shalt.err (!%p2822_p7)
}
 0xdfe   : > { %s2826_s29 = scalar_lea.hbm %s3396_s1, 128  ;;  %s2830_s0 = scalar_lea.hbm %s3455_s11, 256 }
 0xdff   : > { %p2827_p9 = scmp.ne.s32.totalorder %s3396_s1, %s2826_s29  ;;  %p2831_p12 = scmp.lt.s32.totalorder %s3396_s1, %s3455_s11 }
 0xe00   : > { %p2832_p13 = scmp.lt.s32.totalorder %s2830_s0, %s2826_s29 }
 0xe01   : > { %p2828_p10 = pnand %p2827_p9, %p3005_p4 }
 0xe02   : > { %p2833_p0 = por %p2832_p13, %p2831_p12 }
 0xe03   : > { %p2829_p11 = pneg %p2828_p10 }
 0xe05   : > { %p2834_p1 = pnand %p2833_p0, %p2829_p11 }
 0xe07   : > { %2837 = shalt.err (!%p2834_p1)
}
 0xe08   : > { %2672 = dma.vmem_to_hbm [thread:$0]  (%p3005_p4), %s3398_s25, 128, %s3396_s1, %s2103_s24   ;;  %v2671_v20 = vpop.f32.mrf.mxu1 }
 0xe09 PF: > { %p2683_p2 = scmp.ge.s32.totalorder %s2892_s26, 2  ;;  %s2151_s17 = sand.u32 1, %s2872_s21  }
 0xe0a   : > { %s2152_s19 = scalar_lea.sflag [#allocation4], %s2151_s17 }
 0xe0b   : > { %p2677_p3 = pnand %p2683_p2, %p3012_p8 }
 0xe0d   : > { %p2678_p5 = pneg %p2677_p3 }
 0xe0f   : > { %2863 = dma.done.wait (%p2678_p5), %s2152_s19, 128  }
 0xe10   : > { %2865 = vsyncadd (%p2678_p5), %s2152_s19, 4294967168  ;;  %s2161_s27 = scalar_lea.sflag [#allocation6], %s2151_s17 }
 0xe11   : > { %2867 = dma.done.wait (%p2678_p5), %s2161_s27, 256  }
 0xe12   : > { %2869 = vsyncadd (%p2678_p5), %s2161_s27, 4294967040  ;;  %s29_s26 = sadd.s32 1, %s2892_s26   ;;  %s3469_s1 = sld [smem:[#allocation11_spill]] }
 0xe13   : > { %p26_p6 = scmp.ge.s32.totalorder %s29_s26, 4   ;;  %s3470_s24 = sld [smem:[#allocation9_spill]] }
 0xe14   : > { %s3471_s25 = sld [smem:[#allocation10_spill]]  ;;  %s3472_s21 = smov %s2876_s22 }
 0xe15   : > { %s3473_s22 = smov %s2880_s23  ;;  %28 = sbr.rel (!%p26_p6) target bundleno = 9 (0x9), region = 166 }
 0xe18   : > { %s3474_s23 = smov %s3469_s1 }
 0xe1a   :  { %2166 = vsyncpa [#allocation4], 1 }
 0xe1b   :  { %2168 = vsyncpa [#allocation4 + $0x1], 1 }
 0xe1c   :  { %2169 = vsyncpa [#allocation6], 1 }
 0xe1d   :  { %2171 = vsyncpa [#allocation6 + $0x1], 1 }

</bundles_post_ra>
